<compile_context>
chip_gen: v7x
topology: tpu7x:2x2x1
jax: 0.10.0
libtpu: 0.0.40
codegen_flags: <defaults>
</compile_context>

<pallas_src>
import functools

import jax
import jax.numpy as jnp
from jax.experimental import pallas as pl
from jax.experimental.pallas import tpu as pltpu

EPS = 1e-5
# Explicit scoped-VMEM budget: well above the actual double-buffered usage of
# the tiles below (< ~12 MiB) and below v7x's 64 MiB physical VMEM.
VMEM_LIMIT = 48 * 1024 * 1024


# ----------------------------------------------------------------------------
# Tiling / padding helpers
# ----------------------------------------------------------------------------
def _round_up(x, m):
    return (x + m - 1) // m * m


def _kn_tiles(k, n):
    """Lane- and MXU-friendly padding + tile sizes for the K / N matmul dims."""
    k_pad = _round_up(k, 128)
    if k_pad <= 1024:
        tk = k_pad
    else:
        # Prefer 256-multiples (clean vmatmul cadence on v6e/v7x 256x256 MXUs).
        tk = next(t for t in (1024, 768, 512, 384, 256, 128) if k_pad % t == 0)
    n_pad = _round_up(n, 128)
    if n_pad <= 512:
        tn = n_pad            # nt == 1: A stream read from HBM exactly once.
    else:
        tn = next(t for t in (512, 256, 128) if n_pad % t == 0)
    return k_pad, tk, n_pad, tn


def _m_tiles(m):
    m_pad = _round_up(m, 256)
    # tm up to 512, but keep mt >= 2 when m allows so the "parallel" M axis
    # can still shard across v7x's two TensorCores (nt is typically 1).
    tm = 512 if (m_pad >= 1024 and m_pad % 512 == 0) else 256
    return m_pad, tm


def _ew_tiles(m_pad, n_pad):
    tm = next(t for t in (1024, 512, 256) if m_pad % t == 0)
    if n_pad <= 512:
        tn = n_pad
    else:
        tn = next(t for t in (512, 256, 128) if n_pad % t == 0)
    return tm, tn


def _pad2d(x, m_pad, n_pad):
    m, n = x.shape
    if m == m_pad and n == n_pad:
        return x
    return jnp.pad(x, ((0, m_pad - m), (0, n_pad - n)))


def _pad_vec(v, n_pad, fill):
    n = v.shape[0]
    return jnp.pad(v, (0, n_pad - n),
                   constant_values=fill).reshape(1, n_pad).astype(jnp.float32)


# ----------------------------------------------------------------------------
# Pallas kernel 1: tiled matmul (conv) with fused partial-BN-stats epilogue
# ----------------------------------------------------------------------------
def _matmul_stats_kernel(a_ref, b_ref, y_ref, ps_ref, pq_ref, acc_ref):
    k = pl.program_id(2)

    @pl.when(k == 0)
    def _init():
        acc_ref[...] = jnp.zeros_like(acc_ref)

    acc_ref[...] += jnp.dot(a_ref[...], b_ref[...],
                            preferred_element_type=jnp.float32)

    @pl.when(k == pl.num_programs(2) - 1)
    def _flush():
        acc = acc_ref[...]
        y_ref[...] = acc.astype(y_ref.dtype)        # bf16 writeback (halved)
        # Fused BatchNorm statistics epilogue: per-(M-tile, channel) partial
        # sums / sums-of-squares from the f32 accumulator.  Row 0 of the
        # (8, tn) block carries the sums, the other rows are zero, so a plain
        # sum over axis 0 outside the kernel yields the totals.
        s = jnp.sum(acc, axis=0, keepdims=True)
        q = jnp.sum(acc * acc, axis=0, keepdims=True)
        rows = jax.lax.broadcasted_iota(jnp.int32, ps_ref.shape, 0)
        ps_ref[...] = jnp.where(rows == 0, s, 0.0)
        pq_ref[...] = jnp.where(rows == 0, q, 0.0)


def conv_matmul_stats(a_bf16, b_bf16, tm, tk, tn):
    m_pad, k_pad = a_bf16.shape
    _, n_pad = b_bf16.shape
    mt, nt, kt = m_pad // tm, n_pad // tn, k_pad // tk
    cost = pl.CostEstimate(
        flops=2 * m_pad * n_pad * k_pad,
        transcendentals=0,
        bytes_accessed=(2 * m_pad * k_pad * nt + 2 * k_pad * n_pad * mt
                        + 2 * m_pad * n_pad + 8 * mt * 8 * n_pad),
    )
    return pl.pallas_call(
        _matmul_stats_kernel,
        grid_spec=pltpu.PrefetchScalarGridSpec(
            num_scalar_prefetch=0,
            grid=(mt, nt, kt),
            in_specs=[pl.BlockSpec((tm, tk), lambda i, j, k: (i, k)),
                      pl.BlockSpec((tk, tn), lambda i, j, k: (k, j))],
            out_specs=(pl.BlockSpec((tm, tn), lambda i, j, k: (i, j)),
                       pl.BlockSpec((8, tn), lambda i, j, k: (i, j)),
                       pl.BlockSpec((8, tn), lambda i, j, k: (i, j))),
            scratch_shapes=[pltpu.VMEM((tm, tn), jnp.float32)]),
        out_shape=(jax.ShapeDtypeStruct((m_pad, n_pad), jnp.bfloat16),
                   jax.ShapeDtypeStruct((mt * 8, n_pad), jnp.float32),
                   jax.ShapeDtypeStruct((mt * 8, n_pad), jnp.float32)),
        compiler_params=pltpu.CompilerParams(
            dimension_semantics=("parallel", "parallel", "arbitrary"),
            vmem_limit_bytes=VMEM_LIMIT),
        cost_estimate=cost,
    )(a_bf16, b_bf16)


# ----------------------------------------------------------------------------
# Pallas kernel 2: BN-apply + ReLU (epilogue of conv1) -> bf16 output
# ----------------------------------------------------------------------------
def _bn_relu_kernel(y_ref, s_ref, t_ref, o_ref):
    v = y_ref[...].astype(jnp.float32) * s_ref[...] + t_ref[...]
    o_ref[...] = jnp.maximum(v, 0.0).astype(o_ref.dtype)


def bn_relu_apply(y, scale, shift):
    m_pad, n_pad = y.shape
    tm, tn = _ew_tiles(m_pad, n_pad)
    grid = (m_pad // tm, n_pad // tn)
    data = pl.BlockSpec((tm, tn), lambda i, j: (i, j))
    vec = pl.BlockSpec((1, tn), lambda i, j: (0, j))
    return pl.pallas_call(
        _bn_relu_kernel,
        grid_spec=pltpu.PrefetchScalarGridSpec(
            num_scalar_prefetch=0, grid=grid,
            in_specs=[data, vec, vec], out_specs=data),
        out_shape=jax.ShapeDtypeStruct((m_pad, n_pad), jnp.bfloat16),
        compiler_params=pltpu.CompilerParams(
            dimension_semantics=("parallel", "parallel"),
            vmem_limit_bytes=VMEM_LIMIT),
    )(y, scale, shift)


# ----------------------------------------------------------------------------
# Pallas kernel 3: fused bn2-apply + (shortcut-BN or identity add) + ReLU
#                  (+ preact output only when is_last)
# ----------------------------------------------------------------------------
def _bn_add_relu_kernel(*refs, has_sc_bn, emit_preact):
    n_in = 6 if has_sc_bn else 4
    in_refs, out_refs = refs[:n_in], refs[n_in:]
    y2 = in_refs[0][...].astype(jnp.float32)
    s2 = in_refs[1][...]
    t2 = in_refs[2][...]
    yr = in_refs[3][...].astype(jnp.float32)
    if has_sc_bn:
        sc = yr * in_refs[4][...] + in_refs[5][...]
    else:
        sc = yr                       # identity shortcut: no dead multiplies
    p = y2 * s2 + t2 + sc
    out_refs[0][...] = jnp.maximum(p, 0.0)
    if emit_preact:
        out_refs[1][...] = p


def bn_add_relu_apply(y2, s2, t2, yr, sr, tr, *, emit_preact):
    has_sc_bn = sr is not None
    m_pad, n_pad = y2.shape
    tm, tn = _ew_tiles(m_pad, n_pad)
    grid = (m_pad // tm, n_pad // tn)
    data = pl.BlockSpec((tm, tn), lambda i, j: (i, j))
    vec = pl.BlockSpec((1, tn), lambda i, j: (0, j))
    shp = jax.ShapeDtypeStruct((m_pad, n_pad), jnp.float32)

    in_specs = [data, vec, vec, data]
    args = [y2, s2, t2, yr]
    if has_sc_bn:
        in_specs += [vec, vec]
        args += [sr, tr]
    if emit_preact:
        out_specs, out_shape = (data, data), (shp, shp)
    else:
        out_specs, out_shape = data, shp

    kern = functools.partial(_bn_add_relu_kernel,
                             has_sc_bn=has_sc_bn, emit_preact=emit_preact)
    return pl.pallas_call(
        kern,
        grid_spec=pltpu.PrefetchScalarGridSpec(
            num_scalar_prefetch=0, grid=grid,
            in_specs=in_specs, out_specs=out_specs),
        out_shape=out_shape,
        compiler_params=pltpu.CompilerParams(
            dimension_semantics=("parallel", "parallel"),
            vmem_limit_bytes=VMEM_LIMIT),
    )(*args)


# ----------------------------------------------------------------------------
# BN stats finalize (tiny f32 scalar math; stays in plain JAX)
# ----------------------------------------------------------------------------
def _bn_scale_shift(psum, psq, gamma, beta, m_real):
    # NOTE: E[x^2]-E[x]^2 in f32; cancellation-prone if |mean| >> std.  Fine
    # for post-conv (zero-mean-ish) activations; revisit (shifted/two-pass
    # variance) if used on data with large DC offsets.
    total = jnp.sum(psum, axis=0, keepdims=True)       # (1, N_pad)
    total_sq = jnp.sum(psq, axis=0, keepdims=True)
    mean = total / m_real
    var = jnp.maximum(total_sq / m_real - mean * mean, 0.0)   # biased (train)
    scale = gamma * jax.lax.rsqrt(var + EPS)
    shift = beta - mean * scale
    return scale, shift


# ----------------------------------------------------------------------------
# Plain-JAX glue: im2col patch extraction, weight layout prep
# ----------------------------------------------------------------------------
def _im2col(x_nhwc, k, stride, pad):
    # TODO(synk): fuse patch extraction into the matmul kernel (overlapping
    # spatial windows via in-kernel DMA with halo) to avoid materializing the
    # k*k-times larger patch tensor in HBM.  Mitigated here: assembled in bf16.
    n, h, w, c = x_nhwc.shape
    xp = jnp.pad(x_nhwc, ((0, 0), (pad, pad), (pad, pad), (0, 0)))
    ho = (h + 2 * pad - k) // stride + 1
    wo = (w + 2 * pad - k) // stride + 1
    cols = []
    for ky in range(k):
        for kx in range(k):
            patch = xp[:,
                       ky:ky + (ho - 1) * stride + 1:stride,
                       kx:kx + (wo - 1) * stride + 1:stride,
                       :]
            cols.append(patch)
    patches = jnp.concatenate(cols, axis=-1)           # (N, Ho, Wo, k*k*C)
    return patches.reshape(n * ho * wo, k * k * c), (n, ho, wo)


def _w_to_mat_padded(w_oihw, k_pad, n_pad):
    # PyTorch conv weight (Cout, Cin, kh, kw) -> (kh*kw*Cin, Cout), matching
    # the im2col (ky, kx, ci) column order, zero-padded and cast to bf16.
    cout, cin, kh, kw = w_oihw.shape
    wm = jnp.transpose(w_oihw, (2, 3, 1, 0)).reshape(kh * kw * cin, cout)
    return _pad2d(wm, k_pad, n_pad).astype(jnp.bfloat16)


def prepare_params(params):
    """One-time (hoisted) layout conversion of BasicBlock parameters."""
    planes, in_planes = params["w1"].shape[0], params["w1"].shape[1]
    k1_pad, _, n_pad, _ = _kn_tiles(9 * in_planes, planes)
    k2_pad, _, _, _ = _kn_tiles(9 * planes, planes)
    prep = {
        "w1m": _w_to_mat_padded(params["w1"], k1_pad, n_pad),
        "g1": _pad_vec(params["g1"], n_pad, 1.0),
        "b1": _pad_vec(params["b1"], n_pad, 0.0),
        "w2m": _w_to_mat_padded(params["w2"], k2_pad, n_pad),
        "g2": _pad_vec(params["g2"], n_pad, 1.0),
        "b2": _pad_vec(params["b2"], n_pad, 0.0),
    }
    if "ws" in params:
        ks_pad, _, _, _ = _kn_tiles(in_planes, planes)
        prep["wsm"] = _w_to_mat_padded(params["ws"], ks_pad, n_pad)
        prep["gs"] = _pad_vec(params["gs"], n_pad, 1.0)
        prep["bs"] = _pad_vec(params["bs"], n_pad, 0.0)
    return prep


# ----------------------------------------------------------------------------
# BasicBlock forward (Pallas)
# ----------------------------------------------------------------------------
@functools.partial(jax.jit, static_argnames=("planes", "stride", "is_last"))
def basic_block_forward(x_nchw, prep, *, planes, stride, is_last):
    x = jnp.transpose(x_nchw, (0, 2, 3, 1)).astype(jnp.float32)   # NHWC
    n, h, w, cin = x.shape
    has_proj = "wsm" in prep
    x_bf = x.astype(jnp.bfloat16)          # single cast, reused by all readers

    # ---- conv1 (3x3, stride) -> bn1 -> relu ------------------------------
    p1, (_, ho, wo) = _im2col(x_bf, 3, stride, 1)      # bf16 patches
    m = n * ho * wo
    k1_pad, tk1, n_pad, tn = _kn_tiles(9 * cin, planes)
    m_pad, tm = _m_tiles(m)
    a1 = _pad2d(p1, m_pad, k1_pad)
    y1, ps1, pq1 = conv_matmul_stats(a1, prep["w1m"], tm, tk1, tn)
    s1, t1 = _bn_scale_shift(ps1, pq1, prep["g1"], prep["b1"], m)
    h1 = bn_relu_apply(y1, s1, t1)                     # (m_pad, n_pad) bf16
    h1_nhwc = h1[:m, :planes].reshape(n, ho, wo, planes)

    # ---- conv2 (3x3, stride 1) -------------------------------------------
    p2, _ = _im2col(h1_nhwc, 3, 1, 1)                  # bf16 patches
    k2_pad, tk2, _, _ = _kn_tiles(9 * planes, planes)
    a2 = _pad2d(p2, m_pad, k2_pad)
    y2, ps2, pq2 = conv_matmul_stats(a2, prep["w2m"], tm, tk2, tn)
    s2, t2 = _bn_scale_shift(ps2, pq2, prep["g2"], prep["b2"], m)

    # ---- shortcut ----------------------------------------------------------
    if has_proj:
        psc, _ = _im2col(x_bf, 1, stride, 0)
        ks_pad, tks, _, _ = _kn_tiles(cin, planes)
        asc = _pad2d(psc, m_pad, ks_pad)
        yr, pss, pqs = conv_matmul_stats(asc, prep["wsm"], tm, tks, tn)
        sr, tr = _bn_scale_shift(pss, pqs, prep["gs"], prep["bs"], m)
    else:
        # Identity shortcut: bf16 slab, added directly in the fused kernel
        # (no scale/shift multiply).
        yr = _pad2d(x_bf.reshape(n * h * w, cin), m_pad, n_pad)
        sr = tr = None

    # ---- fused bn2-apply + shortcut(+BN) + residual add + ReLU ------------
    res = bn_add_relu_apply(y2, s2, t2, yr, sr, tr, emit_preact=is_last)
    if is_last:
        out2d, pre2d = res
    else:
        out2d = res

    out = jnp.transpose(out2d[:m, :planes].reshape(n, ho, wo, planes),
                        (0, 3, 1, 2))
    if is_last:
        preact = jnp.transpose(pre2d[:m, :planes].reshape(n, ho, wo, planes),
                               (0, 3, 1, 2))
        return out, preact
    return out


# ----------------------------------------------------------------------------
# Deterministic parameter init (shapes from BasicBlock.__init__)
# ----------------------------------------------------------------------------
def init_params(key, in_planes, planes, stride):
    ks = jax.random.split(key, 8)
    params = {
        "w1": 0.1 * jax.random.normal(ks[0], (planes, in_planes, 3, 3), jnp.float32),
        "g1": 1.0 + 0.05 * jax.random.normal(ks[1], (planes,), jnp.float32),
        "b1": 0.05 * jax.random.normal(ks[2], (planes,), jnp.float32),
        "w2": 0.1 * jax.random.normal(ks[3], (planes, planes, 3, 3), jnp.float32),
        "g2": 1.0 + 0.05 * jax.random.normal(ks[4], (planes,), jnp.float32),
        "b2": 0.05 * jax.random.normal(ks[5], (planes,), jnp.float32),
    }
    if stride != 1 or in_planes != planes:
        params["ws"] = 0.1 * jax.random.normal(ks[6], (planes, in_planes, 1, 1), jnp.float32)
        params["gs"] = jnp.ones((planes,), jnp.float32)
        params["bs"] = 0.05 * jax.random.normal(ks[7], (planes,), jnp.float32)
    return params


# ----------------------------------------------------------------------------
# Pure-JAX reference (for correctness check)
# ----------------------------------------------------------------------------
def _conv_ref(x_nhwc, w_oihw, stride, pad):
    w_hwio = jnp.transpose(w_oihw, (2, 3, 1, 0))
    return jax.lax.conv_general_dilated(
        x_nhwc, w_hwio, window_strides=(stride, stride),
        padding=((pad, pad), (pad, pad)),
        dimension_numbers=("NHWC", "HWIO", "NHWC"),
        precision=jax.lax.Precision.HIGHEST)


def _bn_ref(x_nhwc, g, b):
    mean = jnp.mean(x_nhwc, axis=(0, 1, 2), keepdims=True)
    var = jnp.mean((x_nhwc - mean) ** 2, axis=(0, 1, 2), keepdims=True)
    return (x_nhwc - mean) * jax.lax.rsqrt(var + EPS) * g.reshape(1, 1, 1, -1) \
        + b.reshape(1, 1, 1, -1)


def ref_forward(x_nchw, params, stride, is_last):
    x = jnp.transpose(x_nchw, (0, 2, 3, 1)).astype(jnp.float32)
    cin = x.shape[-1]
    planes = params["w1"].shape[0]
    h1 = jax.nn.relu(_bn_ref(_conv_ref(x, params["w1"], stride, 1),
                             params["g1"], params["b1"]))
    h2 = _bn_ref(_conv_ref(h1, params["w2"], 1, 1), params["g2"], params["b2"])
    if stride != 1 or cin != planes:
        sc = _bn_ref(_conv_ref(x, params["ws"], stride, 0),
                     params["gs"], params["bs"])
    else:
        sc = x
    preact = h2 + sc
    out = jax.nn.relu(preact)
    out = jnp.transpose(out, (0, 3, 1, 2))
    preact = jnp.transpose(preact, (0, 3, 1, 2))
    return (out, preact) if is_last else out


# ----------------------------------------------------------------------------
if __name__ == "__main__":
    key = jax.random.PRNGKey(0)
    kx, kp1, kp2 = jax.random.split(key, 3)

    # Input in PyTorch NCHW convention: batch=2, channels=4, spatial=16x16.
    x = jax.random.normal(kx, (2, 4, 16, 16), jnp.float32)

    # Config 1: identity shortcut (in_planes == planes, stride == 1).
    params1 = init_params(kp1, in_planes=4, planes=4, stride=1)
    prep1 = prepare_params(params1)
    out1 = basic_block_forward(x, prep1, planes=4, stride=1, is_last=False)
    out1 = jax.block_until_ready(out1)

    # Config 2: 1x1-conv shortcut (planes=8, stride=2) and is_last=True.
    params2 = init_params(kp2, in_planes=4, planes=8, stride=2)
    prep2 = prepare_params(params2)
    out2, preact2 = basic_block_forward(x, prep2, planes=8, stride=2, is_last=True)
    jax.block_until_ready((out2, preact2))

    # Correctness check against a pure-JAX f32 reference.
    ref1 = ref_forward(x, params1, stride=1, is_last=False)
    ref2, refp2 = ref_forward(x, params2, stride=2, is_last=True)
    assert out1.shape == (2, 4, 16, 16)
    assert out2.shape == (2, 8, 8, 8) and preact2.shape == (2, 8, 8, 8)
    # Error budget vs. the all-f32 reference: bf16 matmul operands (f32 acc),
    # bf16 input/h1/y/shortcut streams, f32 BN statistics & epilogue math
    # => ~1% relative on O(1) post-BN activations; atol=3e-2 / rtol=2e-2.
    assert jnp.allclose(out1, ref1, atol=3e-2, rtol=2e-2)
    assert jnp.allclose(out2, ref2, atol=3e-2, rtol=2e-2)
    assert jnp.allclose(preact2, refp2, atol=3e-2, rtol=2e-2)

    print("KERNEL_OK")
</pallas_src>

<mosaic_0001>
module attributes {stable_mosaic.version = 11 : i64} {
  func.func @_matmul_stats_kernel(%arg0: i32, %arg1: i32, %arg2: i32, %arg3: memref<256x128xbf16, #tpu.memory_space<vmem>>, %arg4: memref<128x128xbf16, #tpu.memory_space<vmem>>, %arg5: memref<256x128xbf16, #tpu.memory_space<vmem>>, %arg6: memref<8x128xf32, #tpu.memory_space<vmem>>, %arg7: memref<8x128xf32, #tpu.memory_space<vmem>>, %arg8: memref<256x128xf32, #tpu.memory_space<vmem>>) attributes {dimension_semantics = [#tpu.dimension_semantics<parallel>, #tpu.dimension_semantics<parallel>, #tpu.dimension_semantics<arbitrary>], iteration_bounds = array<i64: 2, 1, 1>, scalar_prefetch = 0 : i64, scratch_operands = 1 : i64, tpu.core_type = #tpu.core_type<tc>, window_params = [{transform_indices = @transform_0, window_bounds = array<i64: 256, 128>}, {transform_indices = @transform_1, window_bounds = array<i64: 128, 128>}, {transform_indices = @transform_2, window_bounds = array<i64: 256, 128>}, {transform_indices = @transform_3, window_bounds = array<i64: 8, 128>}, {transform_indices = @transform_4, window_bounds = array<i64: 8, 128>}]} {
    %c0_i32 = arith.constant 0 : i32
    %0 = arith.cmpi eq, %arg2, %c0_i32 : i32
    %1 = arith.extui %0 : i1 to i32
    %c0_i32_0 = arith.constant 0 : i32
    %2 = arith.cmpi ne, %1, %c0_i32_0 : i32
    scf.if %2 {
      %cst_10 = arith.constant 0.000000e+00 : f32
      %12 = vector.broadcast %cst_10 : f32 to vector<256x128xf32>
      %c0_11 = arith.constant 0 : index
      %c0_12 = arith.constant 0 : index
      %13 = vector.load %arg8[%c0_11, %c0_12] : memref<256x128xf32, #tpu.memory_space<vmem>>, vector<256x128xf32>
      tpu.vector_store %arg8[%c0_11, %c0_12], %12 {strides = array<i32>} : memref<256x128xf32, #tpu.memory_space<vmem>>, vector<256x128xf32>,
    } else {
    }
    %c0 = arith.constant 0 : index
    %c0_1 = arith.constant 0 : index
    %3 = vector.load %arg8[%c0, %c0_1] : memref<256x128xf32, #tpu.memory_space<vmem>>, vector<256x128xf32>
    %c0_2 = arith.constant 0 : index
    %c0_3 = arith.constant 0 : index
    %4 = vector.load %arg3[%c0_2, %c0_3] : memref<256x128xbf16, #tpu.memory_space<vmem>>, vector<256x128xbf16>
    %c0_4 = arith.constant 0 : index
    %c0_5 = arith.constant 0 : index
    %5 = vector.load %arg4[%c0_4, %c0_5] : memref<128x128xbf16, #tpu.memory_space<vmem>>, vector<128x128xbf16>
    %cst = arith.constant dense<0.000000e+00> : vector<256x128xf32>
    %6 = tpu.matmul %4, %5, %cst {dimension_numbers = #tpu.dot_dimension_numbers<[1], [0], [0], [1], [0, 0, 1, 1], [], []>} : vector<256x128xbf16>, vector<128x128xbf16>, vector<256x128xf32> -> vector<256x128xf32>
    %7 = arith.addf %3, %6 : vector<256x128xf32>
    %c0_6 = arith.constant 0 : index
    %c0_7 = arith.constant 0 : index
    %8 = vector.load %arg8[%c0_6, %c0_7] : memref<256x128xf32, #tpu.memory_space<vmem>>, vector<256x128xf32>
    tpu.vector_store %arg8[%c0_6, %c0_7], %7 {strides = array<i32>} : memref<256x128xf32, #tpu.memory_space<vmem>>, vector<256x128xf32>,
    %c0_i32_8 = arith.constant 0 : i32
    %9 = arith.cmpi eq, %arg2, %c0_i32_8 : i32
    %10 = arith.extui %9 : i1 to i32
    %c0_i32_9 = arith.constant 0 : i32
    %11 = arith.cmpi ne, %10, %c0_i32_9 : i32
    scf.if %11 {
      %c0_10 = arith.constant 0 : index
      %c0_11 = arith.constant 0 : index
      %12 = vector.load %arg8[%c0_10, %c0_11] : memref<256x128xf32, #tpu.memory_space<vmem>>, vector<256x128xf32>
      %13 = arith.truncf %12 : vector<256x128xf32> to vector<256x128xbf16>
      %c0_12 = arith.constant 0 : index
      %c0_13 = arith.constant 0 : index
      %14 = vector.load %arg5[%c0_12, %c0_13] : memref<256x128xbf16, #tpu.memory_space<vmem>>, vector<256x128xbf16>
      tpu.vector_store %arg5[%c0_12, %c0_13], %13 {strides = array<i32>} : memref<256x128xbf16, #tpu.memory_space<vmem>>, vector<256x128xbf16>,
      %cst_14 = arith.constant dense<0.000000e+00> : vector<128xf32>
      %15 = vector.multi_reduction <add>, %12, %cst_14 [0] : vector<256x128xf32> to vector<128xf32>
      %16 = vector.shape_cast %15 : vector<128xf32> to vector<1x128xf32>
      %17 = arith.mulf %12, %12 : vector<256x128xf32>
      %cst_15 = arith.constant dense<0.000000e+00> : vector<128xf32>
      %18 = vector.multi_reduction <add>, %17, %cst_15 [0] : vector<256x128xf32> to vector<128xf32>
      %19 = vector.shape_cast %18 : vector<128xf32> to vector<1x128xf32>
      %20 = tpu.iota {dimensions = array<i32: 0>} : vector<8x128xi32>
      %c0_i32_16 = arith.constant 0 : i32
      %21 = vector.broadcast %c0_i32_16 : i32 to vector<8x128xi32>
      %22 = arith.cmpi eq, %20, %21 : vector<8x128xi32>
      %cst_17 = arith.constant 0.000000e+00 : f32
      %23 = vector.shape_cast %16 : vector<1x128xf32> to vector<1x128xf32>
      %24 = vector.broadcast %23 : vector<1x128xf32> to vector<8x128xf32>
      %25 = vector.broadcast %cst_17 : f32 to vector<8x128xf32>
      %26 = arith.select %22, %24, %25 : vector<8x128xi1>, vector<8x128xf32>
      %c0_18 = arith.constant 0 : index
      %c0_19 = arith.constant 0 : index
      %27 = vector.load %arg6[%c0_18, %c0_19] : memref<8x128xf32, #tpu.memory_space<vmem>>, vector<8x128xf32>
      tpu.vector_store %arg6[%c0_18, %c0_19], %26 {strides = array<i32>} : memref<8x128xf32, #tpu.memory_space<vmem>>, vector<8x128xf32>,
      %c0_i32_20 = arith.constant 0 : i32
      %28 = vector.broadcast %c0_i32_20 : i32 to vector<8x128xi32>
      %29 = arith.cmpi eq, %20, %28 : vector<8x128xi32>
      %cst_21 = arith.constant 0.000000e+00 : f32
      %30 = vector.shape_cast %19 : vector<1x128xf32> to vector<1x128xf32>
      %31 = vector.broadcast %30 : vector<1x128xf32> to vector<8x128xf32>
      %32 = vector.broadcast %cst_21 : f32 to vector<8x128xf32>
      %33 = arith.select %29, %31, %32 : vector<8x128xi1>, vector<8x128xf32>
      %c0_22 = arith.constant 0 : index
      %c0_23 = arith.constant 0 : index
      %34 = vector.load %arg7[%c0_22, %c0_23] : memref<8x128xf32, #tpu.memory_space<vmem>>, vector<8x128xf32>
      tpu.vector_store %arg7[%c0_22, %c0_23], %33 {strides = array<i32>} : memref<8x128xf32, #tpu.memory_space<vmem>>, vector<8x128xf32>,
    } else {
    }
    return
  }
  func.func @transform_0(%arg0: i32, %arg1: i32, %arg2: i32) -> (i32, i32) {
    %c0_i32 = arith.constant 0 : i32
    return %arg0, %arg2 : i32, i32
  }
  func.func @transform_1(%arg0: i32, %arg1: i32, %arg2: i32) -> (i32, i32) {
    %c0_i32 = arith.constant 0 : i32
    return %arg2, %arg1 : i32, i32
  }
  func.func @transform_2(%arg0: i32, %arg1: i32, %arg2: i32) -> (i32, i32) {
    %c0_i32 = arith.constant 0 : i32
    return %arg0, %arg1 : i32, i32
  }
  func.func @transform_3(%arg0: i32, %arg1: i32, %arg2: i32) -> (i32, i32) {
    %c0_i32 = arith.constant 0 : i32
    return %arg0, %arg1 : i32, i32
  }
  func.func @transform_4(%arg0: i32, %arg1: i32, %arg2: i32) -> (i32, i32) {
    %c0_i32 = arith.constant 0 : i32
    return %arg0, %arg1 : i32, i32
  }
}

module attributes {stable_mosaic.version = 11 : i64} {
  func.func @_bn_relu_kernel(%arg0: i32, %arg1: i32, %arg2: memref<512x128xbf16, #tpu.memory_space<vmem>>, %arg3: memref<1x128xf32, #tpu.memory_space<vmem>>, %arg4: memref<1x128xf32, #tpu.memory_space<vmem>>, %arg5: memref<512x128xbf16, #tpu.memory_space<vmem>>) attributes {dimension_semantics = [#tpu.dimension_semantics<parallel>, #tpu.dimension_semantics<parallel>], iteration_bounds = array<i64: 1, 1>, scalar_prefetch = 0 : i64, scratch_operands = 0 : i64, tpu.core_type = #tpu.core_type<tc>, window_params = [{transform_indices = @transform_0, window_bounds = array<i64: 512, 128>}, {transform_indices = @transform_1, window_bounds = array<i64: 1, 128>}, {transform_indices = @transform_2, window_bounds = array<i64: 1, 128>}, {transform_indices = @transform_3, window_bounds = array<i64: 512, 128>}]} {
    %c0 = arith.constant 0 : index
    %c0_0 = arith.constant 0 : index
    %0 = vector.load %arg2[%c0, %c0_0] : memref<512x128xbf16, #tpu.memory_space<vmem>>, vector<512x128xbf16>
    %1 = arith.extf %0 : vector<512x128xbf16> to vector<512x128xf32>
    %c0_1 = arith.constant 0 : index
    %c0_2 = arith.constant 0 : index
    %2 = vector.load %arg3[%c0_1, %c0_2] : memref<1x128xf32, #tpu.memory_space<vmem>>, vector<1x128xf32>
    %3 = vector.broadcast %2 : vector<1x128xf32> to vector<512x128xf32>
    %4 = arith.mulf %1, %3 : vector<512x128xf32>
    %c0_3 = arith.constant 0 : index
    %c0_4 = arith.constant 0 : index
    %5 = vector.load %arg4[%c0_3, %c0_4] : memref<1x128xf32, #tpu.memory_space<vmem>>, vector<1x128xf32>
    %6 = vector.broadcast %5 : vector<1x128xf32> to vector<512x128xf32>
    %7 = arith.addf %4, %6 : vector<512x128xf32>
    %cst = arith.constant 0.000000e+00 : f32
    %8 = vector.broadcast %cst : f32 to vector<512x128xf32>
    %9 = arith.maximumf %7, %8 : vector<512x128xf32>
    %10 = arith.truncf %9 : vector<512x128xf32> to vector<512x128xbf16>
    %c0_5 = arith.constant 0 : index
    %c0_6 = arith.constant 0 : index
    %11 = vector.load %arg5[%c0_5, %c0_6] : memref<512x128xbf16, #tpu.memory_space<vmem>>, vector<512x128xbf16>
    tpu.vector_store %arg5[%c0_5, %c0_6], %10 {strides = array<i32>} : memref<512x128xbf16, #tpu.memory_space<vmem>>, vector<512x128xbf16>,
    return
  }
  func.func @transform_0(%arg0: i32, %arg1: i32) -> (i32, i32) {
    %c0_i32 = arith.constant 0 : i32
    return %arg0, %arg1 : i32, i32
  }
  func.func @transform_1(%arg0: i32, %arg1: i32) -> (i32, i32) {
    %c0_i32 = arith.constant 0 : i32
    %c0_i32_0 = arith.constant 0 : i32
    return %c0_i32, %arg1 : i32, i32
  }
  func.func @transform_2(%arg0: i32, %arg1: i32) -> (i32, i32) {
    %c0_i32 = arith.constant 0 : i32
    %c0_i32_0 = arith.constant 0 : i32
    return %c0_i32, %arg1 : i32, i32
  }
  func.func @transform_3(%arg0: i32, %arg1: i32) -> (i32, i32) {
    %c0_i32 = arith.constant 0 : i32
    return %arg0, %arg1 : i32, i32
  }
}

module attributes {stable_mosaic.version = 11 : i64} {
  func.func @_bn_add_relu_kernel(%arg0: i32, %arg1: i32, %arg2: memref<512x128xbf16, #tpu.memory_space<vmem>>, %arg3: memref<1x128xf32, #tpu.memory_space<vmem>>, %arg4: memref<1x128xf32, #tpu.memory_space<vmem>>, %arg5: memref<512x128xbf16, #tpu.memory_space<vmem>>, %arg6: memref<512x128xf32, #tpu.memory_space<vmem>>) attributes {dimension_semantics = [#tpu.dimension_semantics<parallel>, #tpu.dimension_semantics<parallel>], iteration_bounds = array<i64: 1, 1>, scalar_prefetch = 0 : i64, scratch_operands = 0 : i64, tpu.core_type = #tpu.core_type<tc>, window_params = [{transform_indices = @transform_0, window_bounds = array<i64: 512, 128>}, {transform_indices = @transform_1, window_bounds = array<i64: 1, 128>}, {transform_indices = @transform_2, window_bounds = array<i64: 1, 128>}, {transform_indices = @transform_3, window_bounds = array<i64: 512, 128>}, {transform_indices = @transform_4, window_bounds = array<i64: 512, 128>}]} {
    %c0 = arith.constant 0 : index
    %c0_0 = arith.constant 0 : index
    %0 = vector.load %arg2[%c0, %c0_0] : memref<512x128xbf16, #tpu.memory_space<vmem>>, vector<512x128xbf16>
    %1 = arith.extf %0 : vector<512x128xbf16> to vector<512x128xf32>
    %c0_1 = arith.constant 0 : index
    %c0_2 = arith.constant 0 : index
    %2 = vector.load %arg3[%c0_1, %c0_2] : memref<1x128xf32, #tpu.memory_space<vmem>>, vector<1x128xf32>
    %c0_3 = arith.constant 0 : index
    %c0_4 = arith.constant 0 : index
    %3 = vector.load %arg4[%c0_3, %c0_4] : memref<1x128xf32, #tpu.memory_space<vmem>>, vector<1x128xf32>
    %c0_5 = arith.constant 0 : index
    %c0_6 = arith.constant 0 : index
    %4 = vector.load %arg5[%c0_5, %c0_6] : memref<512x128xbf16, #tpu.memory_space<vmem>>, vector<512x128xbf16>
    %5 = arith.extf %4 : vector<512x128xbf16> to vector<512x128xf32>
    %6 = vector.broadcast %2 : vector<1x128xf32> to vector<512x128xf32>
    %7 = arith.mulf %1, %6 : vector<512x128xf32>
    %8 = vector.broadcast %3 : vector<1x128xf32> to vector<512x128xf32>
    %9 = arith.addf %7, %8 : vector<512x128xf32>
    %10 = arith.addf %9, %5 : vector<512x128xf32>
    %cst = arith.constant 0.000000e+00 : f32
    %11 = vector.broadcast %cst : f32 to vector<512x128xf32>
    %12 = arith.maximumf %10, %11 : vector<512x128xf32>
    %c0_7 = arith.constant 0 : index
    %c0_8 = arith.constant 0 : index
    %13 = vector.load %arg6[%c0_7, %c0_8] : memref<512x128xf32, #tpu.memory_space<vmem>>, vector<512x128xf32>
    tpu.vector_store %arg6[%c0_7, %c0_8], %12 {strides = array<i32>} : memref<512x128xf32, #tpu.memory_space<vmem>>, vector<512x128xf32>,
    return
  }
  func.func @transform_0(%arg0: i32, %arg1: i32) -> (i32, i32) {
    %c0_i32 = arith.constant 0 : i32
    return %arg0, %arg1 : i32, i32
  }
  func.func @transform_1(%arg0: i32, %arg1: i32) -> (i32, i32) {
    %c0_i32 = arith.constant 0 : i32
    %c0_i32_0 = arith.constant 0 : i32
    return %c0_i32, %arg1 : i32, i32
  }
  func.func @transform_2(%arg0: i32, %arg1: i32) -> (i32, i32) {
    %c0_i32 = arith.constant 0 : i32
    %c0_i32_0 = arith.constant 0 : i32
    return %c0_i32, %arg1 : i32, i32
  }
  func.func @transform_3(%arg0: i32, %arg1: i32) -> (i32, i32) {
    %c0_i32 = arith.constant 0 : i32
    return %arg0, %arg1 : i32, i32
  }
  func.func @transform_4(%arg0: i32, %arg1: i32) -> (i32, i32) {
    %c0_i32 = arith.constant 0 : i32
    return %arg0, %arg1 : i32, i32
  }
}

</mosaic_0001>

<bundles_post_ra>
// kernel: basic_block_forward.5
= control target key start
LH: loop header
LB: loop body
LE: loop exit
PB: predicated region body
PF: predicated region fallthrough
CT: control target
= control target key end

     0   :  { %s1502_s0 = inlined_call_operand.vmem [shape: bf16[512,128], index: 0, kind: input, shape index: {}]   ;;  %s1503_s1 = inlined_call_operand.vmem [shape: f32[1,128], index: 1, kind: input, shape index: {}]   ;;  %s1504_s2 = inlined_call_operand.vmem [shape: f32[1,128], index: 2, kind: input, shape index: {}]   ;;  %s1505_s3 = inlined_call_operand.vmem [shape: bf16[512,128], index: 3, kind: output, shape index: {}]  }
   0x1   :  { %v803_v0 = vld [vmem:[%s1502_s0] sm:$0xff]   ;;  %v1090_v4 = vld [vmem:[%s1502_s0 + $0x8] sm:$0xff]   ;;  %v1091_v5 = vld [vmem:[%s1502_s0 + $0x10] sm:$0xff]  }
   0x2   :  { %v1178_v1 = vld [vmem:[%s1503_s1] ss:$0 sm:$0xff]  ;;  %v804_v2 = vunpack.c.l.bf16 %v803_v0  ;;  %v805_v3 = vunpack.c.h.bf16 %v803_v0  ;;  %v1092_v6 = vld [vmem:[%s1502_s0 + $0x18] sm:$0xff]   ;;  %v808_v8 = vunpack.c.l.bf16 %v1090_v4  ;;  %v809_v9 = vunpack.c.h.bf16 %v1090_v4  ;;  %v1094_v33 = vld [vmem:[%s1502_s0 + $0x28] sm:$0xff]  }
   0x3   :  { %v1192_v7 = vld [vmem:[%s1504_s2] ss:$0 sm:$0xff]  ;;  %v812_v10 = vunpack.c.l.bf16 %v1091_v5  ;;  %v813_v11 = vunpack.c.h.bf16 %v1091_v5  ;;  %v816_v14 = vunpack.c.l.bf16 %v1092_v6  ;;  %v817_v15 = vunpack.c.h.bf16 %v1092_v6  ;;  %v1095_v38 = vld [vmem:[%s1502_s0 + $0x30] sm:$0xff]   ;;  %v1096_v43 = vld [vmem:[%s1502_s0 + $0x38] sm:$0xff]  }
   0x4   :  { %v149_v12 = vmul.f32 %v804_v2, %v1178_v1  ;;  %v150_v13 = vmul.f32 %v805_v3, %v1178_v1  ;;  %v151_v16 = vmul.f32 %v808_v8, %v1178_v1  ;;  %v152_v17 = vmul.f32 %v809_v9, %v1178_v1  ;;  %v1093_v28 = vld [vmem:[%s1502_s0 + $0x20] sm:$0xff]  }
   0x5   :  { %v153_v18 = vmul.f32 %v812_v10, %v1178_v1  ;;  %v154_v19 = vmul.f32 %v813_v11, %v1178_v1  ;;  %v155_v22 = vmul.f32 %v816_v14, %v1178_v1  ;;  %v156_v23 = vmul.f32 %v817_v15, %v1178_v1  ;;  %v1097_v0 = vld [vmem:[%s1502_s0 + $0x40] sm:$0xff]   ;;  %v1098_v11 = vld [vmem:[%s1502_s0 + $0x48] sm:$0xff]  }
   0x6   :  { %v220_v20 = vadd.f32 %v1192_v7, %v149_v12  ;;  %v221_v21 = vadd.f32 %v1192_v7, %v150_v13  ;;  %v222_v24 = vadd.f32 %v1192_v7, %v151_v16  ;;  %v223_v25 = vadd.f32 %v1192_v7, %v152_v17  ;;  %v1099_v16 = vld [vmem:[%s1502_s0 + $0x50] sm:$0xff]  }
   0x7   :  { %v224_v26 = vadd.f32 %v1192_v7, %v153_v18  ;;  %v225_v27 = vadd.f32 %v1192_v7, %v154_v19  ;;  %v226_v31 = vadd.f32 %v1192_v7, %v155_v22  ;;  %v227_v32 = vadd.f32 %v1192_v7, %v156_v23 }
   0x8   :  { %v284_v29 = vmax.f32 %v220_v20, 0.0  ;;  %v285_v30 = vmax.f32 %v221_v21, 0.0  ;;  %v286_v34 = vmax.f32 %v222_v24, 0.0  ;;  %v287_v35 = vmax.f32 %v223_v25, 0.0  ;;  %v1100_v25 = vld [vmem:[%s1502_s0 + $0x58] sm:$0xff]  }
   0x9   :  { %v288_v36 = vmax.f32 %v224_v26, 0.0  ;;  %v289_v37 = vmax.f32 %v225_v27, 0.0  ;;  %v290_v40 = vmax.f32 %v226_v31, 0.0  ;;  %v291_v41 = vmax.f32 %v227_v32, 0.0 }
   0xa   :  { %v933_v39 = vpack.c.bf16 %v285_v30, %v284_v29  ;;  %v820_v42 = vunpack.c.l.bf16 %v1093_v28  ;;  %v938_v44 = vpack.c.bf16 %v287_v35, %v286_v34  ;;  %v821_v46 = vunpack.c.h.bf16 %v1093_v28 }
   0xb   :  { %v943_v45 = vpack.c.bf16 %v289_v37, %v288_v36  ;;  %v824_v47 = vunpack.c.l.bf16 %v1094_v33  ;;  %v948_v48 = vpack.c.bf16 %v291_v41, %v290_v40  ;;  %v825_v50 = vunpack.c.h.bf16 %v1094_v33 }
   0xc   :  { %934 = vst [vmem:[%s1505_s3] sm:$0xff] %v933_v39   ;;  %v157_v49 = vmul.f32 %v820_v42, %v1178_v1  ;;  %v828_v51 = vunpack.c.l.bf16 %v1095_v38  ;;  %1121 = vst [vmem:[%s1505_s3 + $0x8] sm:$0xff] %v938_v44   ;;  %v158_v52 = vmul.f32 %v821_v46, %v1178_v1  ;;  %v829_v54 = vunpack.c.h.bf16 %v1095_v38  ;;  %v1101_v38 = vld [vmem:[%s1502_s0 + $0x60] sm:$0xff]  }
   0xd   :  { %1122 = vst [vmem:[%s1505_s3 + $0x10] sm:$0xff] %v943_v45   ;;  %v159_v53 = vmul.f32 %v824_v47, %v1178_v1  ;;  %v832_v55 = vunpack.c.l.bf16 %v1096_v43  ;;  %1123 = vst [vmem:[%s1505_s3 + $0x18] sm:$0xff] %v948_v48   ;;  %v160_v57 = vmul.f32 %v825_v50, %v1178_v1  ;;  %v833_v59 = vunpack.c.h.bf16 %v1096_v43 }
   0xe   :  { %v228_v56 = vadd.f32 %v1192_v7, %v157_v49  ;;  %v161_v58 = vmul.f32 %v828_v51, %v1178_v1  ;;  %v229_v60 = vadd.f32 %v1192_v7, %v158_v52  ;;  %v162_v62 = vmul.f32 %v829_v54, %v1178_v1  ;;  %v1102_v51 = vld [vmem:[%s1502_s0 + $0x68] sm:$0xff]  }
   0xf   :  { %v230_v61 = vadd.f32 %v1192_v7, %v159_v53  ;;  %v163_v63 = vmul.f32 %v832_v55, %v1178_v1  ;;  %v231_v3 = vadd.f32 %v1192_v7, %v160_v57  ;;  %v164_v5 = vmul.f32 %v833_v59, %v1178_v1 }
  0x10   :  { %v292_v2 = vmax.f32 %v228_v56, 0.0  ;;  %v232_v4 = vadd.f32 %v1192_v7, %v161_v58  ;;  %v293_v6 = vmax.f32 %v229_v60, 0.0  ;;  %v233_v9 = vadd.f32 %v1192_v7, %v162_v62  ;;  %v1103_v60 = vld [vmem:[%s1502_s0 + $0x70] sm:$0xff]  }
  0x11   :  { %v294_v8 = vmax.f32 %v230_v61, 0.0  ;;  %v234_v10 = vadd.f32 %v1192_v7, %v163_v63  ;;  %v295_v12 = vmax.f32 %v231_v3, 0.0  ;;  %v235_v14 = vadd.f32 %v1192_v7, %v164_v5 }
  0x12   :  { %v296_v13 = vmax.f32 %v232_v4, 0.0  ;;  %v836_v15 = vunpack.c.l.bf16 %v1097_v0  ;;  %v953_v17 = vpack.c.bf16 %v293_v6, %v292_v2  ;;  %v297_v18 = vmax.f32 %v233_v9, 0.0  ;;  %v1104_v2 = vld [vmem:[%s1502_s0 + $0x78] sm:$0xff]  }
  0x13   :  { %v298_v19 = vmax.f32 %v234_v10, 0.0  ;;  %v837_v20 = vunpack.c.h.bf16 %v1097_v0  ;;  %v958_v21 = vpack.c.bf16 %v295_v12, %v294_v8  ;;  %v299_v22 = vmax.f32 %v235_v14, 0.0  ;;  %v1105_v12 = vld [vmem:[%s1502_s0 + $0x80] sm:$0xff]  }
  0x14   :  { %v165_v23 = vmul.f32 %v836_v15, %v1178_v1  ;;  %v840_v24 = vunpack.c.l.bf16 %v1098_v11  ;;  %1124 = vst [vmem:[%s1505_s3 + $0x20] sm:$0xff] %v953_v17   ;;  %v963_v26 = vpack.c.bf16 %v297_v18, %v296_v13  ;;  %v841_v28 = vunpack.c.h.bf16 %v1098_v11 }
  0x15   :  { %v166_v27 = vmul.f32 %v837_v20, %v1178_v1  ;;  %v844_v29 = vunpack.c.l.bf16 %v1099_v16  ;;  %1125 = vst [vmem:[%s1505_s3 + $0x28] sm:$0xff] %v958_v21   ;;  %v968_v30 = vpack.c.bf16 %v299_v22, %v298_v19  ;;  %v845_v33 = vunpack.c.h.bf16 %v1099_v16 }
  0x16   :  { %v236_v31 = vadd.f32 %v1192_v7, %v165_v23  ;;  %v167_v32 = vmul.f32 %v840_v24, %v1178_v1  ;;  %1126 = vst [vmem:[%s1505_s3 + $0x30] sm:$0xff] %v963_v26   ;;  %v168_v35 = vmul.f32 %v841_v28, %v1178_v1  ;;  %v848_v37 = vunpack.c.l.bf16 %v1100_v25 }
  0x17   :  { %v237_v34 = vadd.f32 %v1192_v7, %v166_v27  ;;  %v169_v36 = vmul.f32 %v844_v29, %v1178_v1  ;;  %1127 = vst [vmem:[%s1505_s3 + $0x38] sm:$0xff] %v968_v30   ;;  %v170_v41 = vmul.f32 %v845_v33, %v1178_v1  ;;  %v849_v42 = vunpack.c.h.bf16 %v1100_v25  ;;  %v1106_v29 = vld [vmem:[%s1502_s0 + $0x88] sm:$0xff]  }
  0x18   :  { %v300_v39 = vmax.f32 %v236_v31, 0.0  ;;  %v238_v40 = vadd.f32 %v1192_v7, %v167_v32  ;;  %v239_v44 = vadd.f32 %v1192_v7, %v168_v35  ;;  %v171_v46 = vmul.f32 %v848_v37, %v1178_v1 }
  0x19   :  { %v301_v43 = vmax.f32 %v237_v34, 0.0  ;;  %v240_v45 = vadd.f32 %v1192_v7, %v169_v36  ;;  %v241_v48 = vadd.f32 %v1192_v7, %v170_v41  ;;  %v172_v49 = vmul.f32 %v849_v42, %v1178_v1  ;;  %v1107_v34 = vld [vmem:[%s1502_s0 + $0x90] sm:$0xff]  }
  0x1a   :  { %v302_v47 = vmax.f32 %v238_v40, 0.0  ;;  %v852_v50 = vunpack.c.l.bf16 %v1101_v38  ;;  %v303_v53 = vmax.f32 %v239_v44, 0.0  ;;  %v242_v55 = vadd.f32 %v1192_v7, %v171_v46 }
  0x1b   :  { %v973_v52 = vpack.c.bf16 %v301_v43, %v300_v39  ;;  %v304_v54 = vmax.f32 %v240_v45, 0.0  ;;  %v305_v56 = vmax.f32 %v241_v48, 0.0  ;;  %v243_v57 = vadd.f32 %v1192_v7, %v172_v49  ;;  %v1108_v43 = vld [vmem:[%s1502_s0 + $0x98] sm:$0xff]  }
  0x1c   :  { %v853_v58 = vunpack.c.h.bf16 %v1101_v38  ;;  %v173_v59 = vmul.f32 %v852_v50, %v1178_v1  ;;  %v978_v61 = vpack.c.bf16 %v303_v53, %v302_v47  ;;  %v306_v62 = vmax.f32 %v242_v55, 0.0 }
  0x1d   :  { %1128 = vst [vmem:[%s1505_s3 + $0x40] sm:$0xff] %v973_v52   ;;  %v856_v63 = vunpack.c.l.bf16 %v1102_v51  ;;  %v857_v0 = vunpack.c.h.bf16 %v1102_v51  ;;  %v983_v3 = vpack.c.bf16 %v305_v56, %v304_v54  ;;  %v307_v4 = vmax.f32 %v243_v57, 0.0  ;;  %v1109_v56 = vld [vmem:[%s1502_s0 + $0xa0] sm:$0xff]  }
  0x1e   :  { %v174_v5 = vmul.f32 %v853_v58, %v1178_v1  ;;  %v244_v6 = vadd.f32 %v1192_v7, %v173_v59  ;;  %1129 = vst [vmem:[%s1505_s3 + $0x48] sm:$0xff] %v978_v61   ;;  %v860_v10 = vunpack.c.l.bf16 %v1103_v60  ;;  %v861_v11 = vunpack.c.h.bf16 %v1103_v60 }
  0x1f   :  { %v175_v8 = vmul.f32 %v856_v63, %v1178_v1  ;;  %v176_v9 = vmul.f32 %v857_v0, %v1178_v1  ;;  %1130 = vst [vmem:[%s1505_s3 + $0x50] sm:$0xff] %v983_v3   ;;  %v988_v13 = vpack.c.bf16 %v307_v4, %v306_v62  ;;  %v864_v16 = vunpack.c.l.bf16 %v1104_v2 }
  0x20   :  { %v245_v14 = vadd.f32 %v1192_v7, %v174_v5  ;;  %v308_v15 = vmax.f32 %v244_v6, 0.0  ;;  %v177_v19 = vmul.f32 %v860_v10, %v1178_v1  ;;  %v178_v20 = vmul.f32 %v861_v11, %v1178_v1 }
  0x21   :  { %v246_v17 = vadd.f32 %v1192_v7, %v175_v8  ;;  %v247_v18 = vadd.f32 %v1192_v7, %v176_v9  ;;  %1131 = vst [vmem:[%s1505_s3 + $0x58] sm:$0xff] %v988_v13   ;;  %v865_v22 = vunpack.c.h.bf16 %v1104_v2  ;;  %v179_v23 = vmul.f32 %v864_v16, %v1178_v1  ;;  %v1110_v2 = vld [vmem:[%s1502_s0 + $0xa8] sm:$0xff]   ;;  %v1111_v16 = vld [vmem:[%s1502_s0 + $0xb0] sm:$0xff]  }
  0x22   :  { %v309_v21 = vmax.f32 %v245_v14, 0.0  ;;  %v868_v24 = vunpack.c.l.bf16 %v1105_v12  ;;  %v248_v27 = vadd.f32 %v1192_v7, %v177_v19  ;;  %v249_v28 = vadd.f32 %v1192_v7, %v178_v20 }
  0x23   :  { %v310_v25 = vmax.f32 %v246_v17, 0.0  ;;  %v311_v26 = vmax.f32 %v247_v18, 0.0  ;;  %v180_v31 = vmul.f32 %v865_v22, %v1178_v1  ;;  %v250_v32 = vadd.f32 %v1192_v7, %v179_v23 }
  0x24   :  { %v993_v30 = vpack.c.bf16 %v309_v21, %v308_v15  ;;  %v869_v33 = vunpack.c.h.bf16 %v1105_v12  ;;  %v312_v36 = vmax.f32 %v248_v27, 0.0  ;;  %v313_v37 = vmax.f32 %v249_v28, 0.0  ;;  %v1112_v21 = vld [vmem:[%s1502_s0 + $0xb8] sm:$0xff]  }
  0x25   :  { %v998_v35 = vpack.c.bf16 %v311_v26, %v310_v25  ;;  %v181_v38 = vmul.f32 %v868_v24, %v1178_v1  ;;  %v251_v39 = vadd.f32 %v1192_v7, %v180_v31  ;;  %v314_v40 = vmax.f32 %v250_v32, 0.0 }
  0x26   :  { %1132 = vst [vmem:[%s1505_s3 + $0x60] sm:$0xff] %v993_v30   ;;  %v182_v41 = vmul.f32 %v869_v33, %v1178_v1  ;;  %v872_v42 = vunpack.c.l.bf16 %v1106_v29  ;;  %v1003_v44 = vpack.c.bf16 %v313_v37, %v312_v36  ;;  %v873_v46 = vunpack.c.h.bf16 %v1106_v29 }
  0x27   :  { %1133 = vst [vmem:[%s1505_s3 + $0x68] sm:$0xff] %v998_v35   ;;  %v252_v45 = vadd.f32 %v1192_v7, %v181_v38  ;;  %v876_v47 = vunpack.c.l.bf16 %v1107_v34  ;;  %v315_v48 = vmax.f32 %v251_v39, 0.0  ;;  %v877_v51 = vunpack.c.h.bf16 %v1107_v34  ;;  %v1113_v34 = vld [vmem:[%s1502_s0 + $0xc0] sm:$0xff]  }
  0x28   :  { %v253_v49 = vadd.f32 %v1192_v7, %v182_v41  ;;  %v183_v50 = vmul.f32 %v872_v42, %v1178_v1  ;;  %1134 = vst [vmem:[%s1505_s3 + $0x70] sm:$0xff] %v1003_v44   ;;  %v184_v53 = vmul.f32 %v873_v46, %v1178_v1  ;;  %v880_v55 = vunpack.c.l.bf16 %v1108_v43 }
  0x29   :  { %v316_v52 = vmax.f32 %v252_v45, 0.0  ;;  %v185_v54 = vmul.f32 %v876_v47, %v1178_v1  ;;  %v1008_v57 = vpack.c.bf16 %v315_v48, %v314_v40  ;;  %v186_v60 = vmul.f32 %v877_v51, %v1178_v1  ;;  %v1114_v47 = vld [vmem:[%s1502_s0 + $0xc8] sm:$0xff]  }
  0x2a   :  { %v317_v58 = vmax.f32 %v253_v49, 0.0  ;;  %v254_v59 = vadd.f32 %v1192_v7, %v183_v50  ;;  %v255_v61 = vadd.f32 %v1192_v7, %v184_v53  ;;  %v881_v63 = vunpack.c.h.bf16 %v1108_v43 }
  0x2b   :  { %v256_v62 = vadd.f32 %v1192_v7, %v185_v54  ;;  %v187_v0 = vmul.f32 %v880_v55, %v1178_v1  ;;  %1135 = vst [vmem:[%s1505_s3 + $0x78] sm:$0xff] %v1008_v57   ;;  %v257_v5 = vadd.f32 %v1192_v7, %v186_v60  ;;  %v884_v6 = vunpack.c.l.bf16 %v1109_v56 }
  0x2c   :  { %v1013_v3 = vpack.c.bf16 %v317_v58, %v316_v52  ;;  %v318_v4 = vmax.f32 %v254_v59, 0.0  ;;  %v319_v8 = vmax.f32 %v255_v61, 0.0  ;;  %v188_v10 = vmul.f32 %v881_v63, %v1178_v1  ;;  %v1115_v52 = vld [vmem:[%s1502_s0 + $0xd0] sm:$0xff]   ;;  %v1116_v61 = vld [vmem:[%s1502_s0 + $0xd8] sm:$0xff]  }
  0x2d   :  { %v320_v9 = vmax.f32 %v256_v62, 0.0  ;;  %v258_v11 = vadd.f32 %v1192_v7, %v187_v0  ;;  %v321_v12 = vmax.f32 %v257_v5, 0.0  ;;  %v885_v13 = vunpack.c.h.bf16 %v1109_v56 }
  0x2e   :  { %1136 = vst [vmem:[%s1505_s3 + $0x80] sm:$0xff] %v1013_v3   ;;  %v189_v14 = vmul.f32 %v884_v6, %v1178_v1  ;;  %v888_v15 = vunpack.c.l.bf16 %v1110_v2  ;;  %v1018_v17 = vpack.c.bf16 %v319_v8, %v318_v4  ;;  %v259_v18 = vadd.f32 %v1192_v7, %v188_v10 }
  0x2f   :  { %v322_v19 = vmax.f32 %v258_v11, 0.0  ;;  %v889_v20 = vunpack.c.h.bf16 %v1110_v2  ;;  %v1023_v22 = vpack.c.bf16 %v321_v12, %v320_v9  ;;  %v190_v23 = vmul.f32 %v885_v13, %v1178_v1  ;;  %v1117_v12 = vld [vmem:[%s1502_s0 + $0xe0] sm:$0xff]  }
  0x30   :  { %v260_v24 = vadd.f32 %v1192_v7, %v189_v14  ;;  %v191_v25 = vmul.f32 %v888_v15, %v1178_v1  ;;  %1137 = vst [vmem:[%s1505_s3 + $0x88] sm:$0xff] %v1018_v17   ;;  %v323_v26 = vmax.f32 %v259_v18, 0.0  ;;  %v892_v28 = vunpack.c.l.bf16 %v1111_v16 }
  0x31   :  { %v192_v27 = vmul.f32 %v889_v20, %v1178_v1  ;;  %v893_v29 = vunpack.c.h.bf16 %v1111_v16  ;;  %1138 = vst [vmem:[%s1505_s3 + $0x90] sm:$0xff] %v1023_v22   ;;  %v261_v30 = vadd.f32 %v1192_v7, %v190_v23  ;;  %v896_v33 = vunpack.c.l.bf16 %v1112_v21 }
  0x32   :  { %v324_v31 = vmax.f32 %v260_v24, 0.0  ;;  %v262_v32 = vadd.f32 %v1192_v7, %v191_v25  ;;  %v1028_v35 = vpack.c.bf16 %v323_v26, %v322_v19  ;;  %v193_v37 = vmul.f32 %v892_v28, %v1178_v1 }
  0x33   :  { %v263_v36 = vadd.f32 %v1192_v7, %v192_v27  ;;  %v194_v38 = vmul.f32 %v893_v29, %v1178_v1  ;;  %v325_v39 = vmax.f32 %v261_v30, 0.0  ;;  %v897_v41 = vunpack.c.h.bf16 %v1112_v21  ;;  %v1118_v21 = vld [vmem:[%s1502_s0 + $0xe8] sm:$0xff]  }
  0x34   :  { %v326_v40 = vmax.f32 %v262_v32, 0.0  ;;  %v195_v42 = vmul.f32 %v896_v33, %v1178_v1  ;;  %1139 = vst [vmem:[%s1505_s3 + $0x98] sm:$0xff] %v1028_v35   ;;  %v264_v44 = vadd.f32 %v1192_v7, %v193_v37  ;;  %v900_v46 = vunpack.c.l.bf16 %v1113_v34 }
  0x35   :  { %v327_v43 = vmax.f32 %v263_v36, 0.0  ;;  %v265_v45 = vadd.f32 %v1192_v7, %v194_v38  ;;  %v1033_v48 = vpack.c.bf16 %v325_v39, %v324_v31  ;;  %v196_v49 = vmul.f32 %v897_v41, %v1178_v1  ;;  %v1120_v39 = vld [vmem:[%s1502_s0 + $0xf8] sm:$0xff]  }
  0x36   :  { %v266_v50 = vadd.f32 %v1192_v7, %v195_v42  ;;  %v901_v51 = vunpack.c.h.bf16 %v1113_v34  ;;  %v328_v54 = vmax.f32 %v264_v44, 0.0  ;;  %v197_v56 = vmul.f32 %v900_v46, %v1178_v1  ;;  %v1119_v34 = vld [vmem:[%s1502_s0 + $0xf0] sm:$0xff]  }
  0x37   :  { %v1038_v53 = vpack.c.bf16 %v327_v43, %v326_v40  ;;  %v329_v55 = vmax.f32 %v265_v45, 0.0  ;;  %1140 = vst [vmem:[%s1505_s3 + $0xa0] sm:$0xff] %v1033_v48   ;;  %v267_v57 = vadd.f32 %v1192_v7, %v196_v49  ;;  %v904_v60 = vunpack.c.l.bf16 %v1114_v47 }
  0x38   :  { %v330_v58 = vmax.f32 %v266_v50, 0.0  ;;  %v198_v59 = vmul.f32 %v901_v51, %v1178_v1  ;;  %v268_v63 = vadd.f32 %v1192_v7, %v197_v56  ;;  %v905_v0 = vunpack.c.h.bf16 %v1114_v47 }
  0x39   :  { %1141 = vst [vmem:[%s1505_s3 + $0xa8] sm:$0xff] %v1038_v53   ;;  %v1043_v62 = vpack.c.bf16 %v329_v55, %v328_v54  ;;  %v908_v2 = vunpack.c.l.bf16 %v1115_v52  ;;  %v331_v3 = vmax.f32 %v267_v57, 0.0  ;;  %v199_v5 = vmul.f32 %v904_v60, %v1178_v1 }
  0x3a   :  { %v269_v4 = vadd.f32 %v1192_v7, %v198_v59  ;;  %v909_v6 = vunpack.c.h.bf16 %v1115_v52  ;;  %v332_v8 = vmax.f32 %v268_v63, 0.0  ;;  %v200_v9 = vmul.f32 %v905_v0, %v1178_v1 }
  0x3b   :  { %1142 = vst [vmem:[%s1505_s3 + $0xb0] sm:$0xff] %v1043_v62   ;;  %v201_v10 = vmul.f32 %v908_v2, %v1178_v1  ;;  %v912_v11 = vunpack.c.l.bf16 %v1116_v61  ;;  %v1048_v13 = vpack.c.bf16 %v331_v3, %v330_v58  ;;  %v270_v15 = vadd.f32 %v1192_v7, %v199_v5 }
  0x3c   :  { %v333_v14 = vmax.f32 %v269_v4, 0.0  ;;  %v202_v16 = vmul.f32 %v909_v6, %v1178_v1  ;;  %v271_v17 = vadd.f32 %v1192_v7, %v200_v9  ;;  %v913_v19 = vunpack.c.h.bf16 %v1116_v61 }
  0x3d   :  { %v272_v18 = vadd.f32 %v1192_v7, %v201_v10  ;;  %v203_v20 = vmul.f32 %v912_v11, %v1178_v1  ;;  %1143 = vst [vmem:[%s1505_s3 + $0xb8] sm:$0xff] %v1048_v13   ;;  %v334_v23 = vmax.f32 %v270_v15, 0.0  ;;  %v916_v25 = vunpack.c.l.bf16 %v1117_v12 }
  0x3e   :  { %v1053_v22 = vpack.c.bf16 %v333_v14, %v332_v8  ;;  %v273_v24 = vadd.f32 %v1192_v7, %v202_v16  ;;  %v335_v26 = vmax.f32 %v271_v17, 0.0  ;;  %v204_v28 = vmul.f32 %v913_v19, %v1178_v1 }
  0x3f   :  { %v336_v27 = vmax.f32 %v272_v18, 0.0  ;;  %v274_v29 = vadd.f32 %v1192_v7, %v203_v20  ;;  %v917_v31 = vunpack.c.h.bf16 %v1117_v12  ;;  %v205_v32 = vmul.f32 %v916_v25, %v1178_v1 }
  0x40   :  { %1144 = vst [vmem:[%s1505_s3 + $0xc0] sm:$0xff] %v1053_v22   ;;  %v337_v30 = vmax.f32 %v273_v24, 0.0  ;;  %v920_v33 = vunpack.c.l.bf16 %v1118_v21  ;;  %v1058_v35 = vpack.c.bf16 %v335_v26, %v334_v23  ;;  %v275_v36 = vadd.f32 %v1192_v7, %v204_v28 }
  0x41   :  { %v338_v37 = vmax.f32 %v274_v29, 0.0  ;;  %v921_v38 = vunpack.c.h.bf16 %v1118_v21  ;;  %v206_v41 = vmul.f32 %v917_v31, %v1178_v1  ;;  %v276_v42 = vadd.f32 %v1192_v7, %v205_v32 }
  0x42   :  { %v1063_v40 = vpack.c.bf16 %v337_v30, %v336_v27  ;;  %v207_v43 = vmul.f32 %v920_v33, %v1178_v1  ;;  %1145 = vst [vmem:[%s1505_s3 + $0xc8] sm:$0xff] %v1058_v35   ;;  %v339_v44 = vmax.f32 %v275_v36, 0.0  ;;  %v924_v46 = vunpack.c.l.bf16 %v1119_v34 }
  0x43   :  { %v208_v45 = vmul.f32 %v921_v38, %v1178_v1  ;;  %v925_v47 = vunpack.c.h.bf16 %v1119_v34  ;;  %v277_v48 = vadd.f32 %v1192_v7, %v206_v41  ;;  %v340_v49 = vmax.f32 %v276_v42, 0.0 }
  0x44   :  { %1146 = vst [vmem:[%s1505_s3 + $0xd0] sm:$0xff] %v1063_v40   ;;  %v278_v50 = vadd.f32 %v1192_v7, %v207_v43  ;;  %v928_v51 = vunpack.c.l.bf16 %v1120_v39  ;;  %v1068_v52 = vpack.c.bf16 %v339_v44, %v338_v37  ;;  %v209_v54 = vmul.f32 %v924_v46, %v1178_v1 }
  0x45   :  { %v279_v53 = vadd.f32 %v1192_v7, %v208_v45  ;;  %v210_v55 = vmul.f32 %v925_v47, %v1178_v1  ;;  %v341_v56 = vmax.f32 %v277_v48, 0.0  ;;  %v929_v58 = vunpack.c.h.bf16 %v1120_v39 }
  0x46   :  { %v342_v57 = vmax.f32 %v278_v50, 0.0  ;;  %v211_v59 = vmul.f32 %v928_v51, %v1178_v1  ;;  %1147 = vst [vmem:[%s1505_s3 + $0xd8] sm:$0xff] %v1068_v52   ;;  %v280_v61 = vadd.f32 %v1192_v7, %v209_v54 }
  0x47   :  { %v343_v60 = vmax.f32 %v279_v53, 0.0  ;;  %v281_v62 = vadd.f32 %v1192_v7, %v210_v55  ;;  %v1073_v63 = vpack.c.bf16 %v341_v56, %v340_v49  ;;  %v212_v0 = vmul.f32 %v929_v58, %v1178_v1 }
  0x48   :  { %v282_v2 = vadd.f32 %v1192_v7, %v211_v59  ;;  %v344_v4 = vmax.f32 %v280_v61, 0.0 }
  0x49   :  { %v1078_v3 = vpack.c.bf16 %v343_v60, %v342_v57  ;;  %v345_v5 = vmax.f32 %v281_v62, 0.0  ;;  %1148 = vst [vmem:[%s1505_s3 + $0xe0] sm:$0xff] %v1073_v63   ;;  %v283_v6 = vadd.f32 %v1192_v7, %v212_v0 }
  0x4a   :  { %v346_v8 = vmax.f32 %v282_v2, 0.0 }
  0x4b   :  { %1149 = vst [vmem:[%s1505_s3 + $0xe8] sm:$0xff] %v1078_v3   ;;  %v1083_v9 = vpack.c.bf16 %v345_v5, %v344_v4  ;;  %v347_v10 = vmax.f32 %v283_v6, 0.0 }
  0x4d   :  { %1150 = vst [vmem:[%s1505_s3 + $0xf0] sm:$0xff] %v1083_v9   ;;  %v1088_v1 = vpack.c.bf16 %v347_v10, %v346_v8 }
  0x4f   :  { %1151 = vst [vmem:[%s1505_s3 + $0xf8] sm:$0xff] %v1088_v1  }

// kernel: basic_block_forward.4
= control target key start
LH: loop header
LB: loop body
LE: loop exit
PB: predicated region body
PF: predicated region fallthrough
CT: control target
= control target key end

     0   :  { %s1666_s15 = smov 0   ;;  %s1668_s16 = smov 0   ;;  %s1861_s0 = inlined_call_operand.vmem [shape: bf16[512,128], index: 0, kind: input, shape index: {}]   ;;  %s1862_s1 = inlined_call_operand.vmem [shape: bf16[128,128], index: 1, kind: input, shape index: {}]   ;;  %s1863_s2 = inlined_call_operand.vmem [shape: bf16[512,128], index: 2, kind: output, shape index: {0}]   ;;  %s1864_s3 = inlined_call_operand.vmem [shape: f32[16,128], index: 3, kind: output, shape index: {1}]   ;;  %s1865_s4 = inlined_call_operand.vmem [shape: f32[16,128], index: 4, kind: output, shape index: {2}]  }
   0x1   :  { %s1670_s17 = smov 0  }
   0x2 LB: > { %s34_s18 = sadd.s32 1, %s1635_s16  ;;  %p1289_p0 = scmp.ge.s32.totalorder %s1639_s17, 1  ;;  %s1639_s17 = sphi %s1670_s17, %s15_s17   ;;  %s1635_s16 = sphi %s1668_s16, %s1867_s16   ;;  %s1631_s15 = sphi %s1666_s15, %s1866_s15  }
   0x3   : > { %p36_p1 = scmp.ge.s32.totalorder %s34_s18, 2  ;;  %p214_p2 = scmp.lt.s32.totalorder %s1639_s17, 3 }
   0x5   : > { %s1869_s18 = smov (%p36_p1, %s34_s18), 0  ;;  %p215_p3 = pnand %p1289_p0, %p214_p2 }
   0x6   : > { %v1593_v0 = vld [vmem:[%s1862_s1] sm:$0xff] (!%p215_p3)   ;;  %s1290_s21 = sshll.u32 (!%p215_p3), %s1631_s15, 5  ;;  %v1594_v1 = vld [vmem:[%s1862_s1 + $0x8] sm:$0xff] (!%p215_p3)   ;;  %v1595_v2 = vld [vmem:[%s1862_s1 + $0x10] sm:$0xff] (!%p215_p3)   ;;  %p295_p5 = scmp.lt.s32.totalorder (!%p215_p3), %s1631_s15, 1 }
   0x7   : > { %218 = sbr.rel (%p215_p3) target bundleno = 332 (0x14c), region = 28  ;;  %p269_p4 = scmp.lt.s32.totalorder (!%p215_p3), %s1290_s21, 63  ;;  %1505 = vmatprep.subr.bf16.mxu0 (!%p215_p3), %v1593_v0  ;;  %1553 = vmatprep.subr.bf16.mxu1 (!%p215_p3), %v1593_v0  ;;  %v1596_v3 = vld [vmem:[%s1862_s1 + $0x18] sm:$0xff] (!%p215_p3)   ;;  %v1597_v5 = vld [vmem:[%s1862_s1 + $0x20] sm:$0xff] (!%p215_p3)   ;;  %v1598_v6 = vld [vmem:[%s1862_s1 + $0x28] sm:$0xff] (!%p215_p3)  }
   0x8   : > { %1506 = vmatpush3.bf16.msra.mxu0 (!%p215_p3), %v1593_v0  ;;  %1561 = vmatpush3.bf16.msra.mxu1 (!%p215_p3), %v1593_v0  ;;  %v1599_v8 = vld [vmem:[%s1862_s1 + $0x30] sm:$0xff] (!%p215_p3)   ;;  %v1600_v9 = vld [vmem:[%s1862_s1 + $0x38] sm:$0xff] (!%p215_p3)  }
   0x9   : > { %1507 = vmatprep.subr.bf16.mxu0 (!%p215_p3), %v1594_v1  ;;  %1554 = vmatprep.subr.bf16.mxu1 (!%p215_p3), %v1594_v1 }
   0xc   : > { %1508 = vmatpush3.bf16.msra.mxu0 (!%p215_p3), %v1594_v1  ;;  %1562 = vmatpush3.bf16.msra.mxu1 (!%p215_p3), %v1594_v1 }
   0xd   : > { %1509 = vmatprep.subr.bf16.mxu0 (!%p215_p3), %v1595_v2  ;;  %1555 = vmatprep.subr.bf16.mxu1 (!%p215_p3), %v1595_v2 }
   0xe   : > { %s1871_s21 = smov (!%p269_p4, %s1290_s21), 63  ;;  %s1873_s15 = smov (!%p295_p5, %s1631_s15), 1 }
   0xf   : > { %s1291_s26 = sshll.u32 %s1871_s21, 2  ;;  %s1294_s21 = sshll.u32 %s1873_s15, 3 }
  0x10   : > { %s1704_s29 = scalar_lea.vmem %s1861_s0, %s1291_s26  ;;  %1510 = vmatpush3.bf16.msra.mxu0 %v1595_v2  ;;  %1563 = vmatpush3.bf16.msra.mxu1 %v1595_v2  ;;  %s1746_s20 = scalar_lea.vmem %s1863_s2, %s1291_s26 }
  0x11   : > { %v1601_v4 = vld [vmem:[%s1704_s29] sm:$0xff]   ;;  %1511 = vmatprep.subr.bf16.mxu0 %v1596_v3  ;;  %1556 = vmatprep.subr.bf16.mxu1 %v1596_v3  ;;  %v1602_v10 = vld [vmem:[%s1704_s29 + $0x8] sm:$0xff]   ;;  %v1603_v12 = vld [vmem:[%s1704_s29 + $0x10] sm:$0xff]   ;;  %s301_s24 = scalar_lea.vmem %s1864_s3, %s1294_s21  ;;  %s308_s27 = scalar_lea.vmem %s1865_s4, %s1294_s21 }
  0x12   : > { %1521 = vmatprep.mubr.bf16.mxu0 %v1601_v4  ;;  %v1609_v7 = vld [vmem:[%s1704_s29 + $0x40] sm:$0xff]   ;;  %v1610_v11 = vld [vmem:[%s1704_s29 + $0x48] sm:$0xff]   ;;  %v1611_v13 = vld [vmem:[%s1704_s29 + $0x50] sm:$0xff]  }
  0x13   : > { %1537 = vmatprep.mubr.bf16.mxu1 %v1609_v7  ;;  %v1604_v14 = vld [vmem:[%s1704_s29 + $0x18] sm:$0xff]   ;;  %v1605_v16 = vld [vmem:[%s1704_s29 + $0x20] sm:$0xff]   ;;  %v1606_v18 = vld [vmem:[%s1704_s29 + $0x28] sm:$0xff]  }
  0x14   : > { %1512 = vmatpush3.bf16.msra.mxu0 %v1596_v3  ;;  %1564 = vmatpush3.bf16.msra.mxu1 %v1596_v3  ;;  %v1612_v15 = vld [vmem:[%s1704_s29 + $0x58] sm:$0xff]   ;;  %v1613_v17 = vld [vmem:[%s1704_s29 + $0x60] sm:$0xff]   ;;  %v1614_v19 = vld [vmem:[%s1704_s29 + $0x68] sm:$0xff]  }
  0x15   : > { %1513 = vmatprep.subr.bf16.mxu0 %v1597_v5  ;;  %1557 = vmatprep.subr.bf16.mxu1 %v1597_v5  ;;  %v1607_v20 = vld [vmem:[%s1704_s29 + $0x30] sm:$0xff]   ;;  %v1608_v22 = vld [vmem:[%s1704_s29 + $0x38] sm:$0xff]  }
  0x16   : > { %v1615_v21 = vld [vmem:[%s1704_s29 + $0x70] sm:$0xff]   ;;  %v1616_v23 = vld [vmem:[%s1704_s29 + $0x78] sm:$0xff]  }
  0x18   : > { %1514 = vmatpush3.bf16.msra.mxu0 %v1597_v5  ;;  %1565 = vmatpush3.bf16.msra.mxu1 %v1597_v5 }
  0x19   : > { %1515 = vmatprep.subr.bf16.mxu0 %v1598_v6  ;;  %1558 = vmatprep.subr.bf16.mxu1 %v1598_v6 }
  0x1c   : > { %1516 = vmatpush3.bf16.msra.mxu0 %v1598_v6  ;;  %1566 = vmatpush3.bf16.msra.mxu1 %v1598_v6 }
  0x1d   : > { %1517 = vmatprep.subr.bf16.mxu0 %v1599_v8  ;;  %1559 = vmatprep.subr.bf16.mxu1 %v1599_v8 }
  0x20   : > { %1518 = vmatpush3.bf16.msra.mxu0 %v1599_v8  ;;  %1567 = vmatpush3.bf16.msra.mxu1 %v1599_v8 }
  0x21   : > { %1519 = vmatprep.subr.bf16.mxu0 %v1600_v9  ;;  %1560 = vmatprep.subr.bf16.mxu1 %v1600_v9 }
  0x24   : > { %1520 = vmatpush3.bf16.msra.mxu0 %v1600_v9  ;;  %1568 = vmatpush3.bf16.msra.mxu1 %v1600_v9 }
  0x27   : > { %1522 = vmatmul.mubr.bf16.vlgmr.msra.gmra.mrb[0].mxu0 %v1602_v10  ;;  %1538 = vmatmul.mubr.bf16.vlgmr.msra.gmra.mrb[0].mxu1 %v1610_v11 }
  0x28   : > { %1525 = vmatprep.mubr.bf16.mxu0 %v1603_v12  ;;  %1541 = vmatprep.mubr.bf16.mxu1 %v1611_v13 }
  0x2f   : > { %1526 = vmatmul.mubr.bf16.gmra.mrb[4].mxu0 %v1604_v14  ;;  %1542 = vmatmul.mubr.bf16.gmra.mrb[4].mxu1 %v1612_v15 }
  0x30   : > { %1529 = vmatprep.mubr.bf16.mxu0 %v1605_v16  ;;  %1545 = vmatprep.mubr.bf16.mxu1 %v1613_v17 }
  0x37   : > { %1530 = vmatmul.mubr.bf16.gmra.mrb[8].mxu0 %v1606_v18  ;;  %1546 = vmatmul.mubr.bf16.gmra.mrb[8].mxu1 %v1614_v19 }
  0x38   : > { %1533 = vmatprep.mubr.bf16.mxu0 %v1607_v20  ;;  %1549 = vmatprep.mubr.bf16.mxu1 %v1615_v21 }
  0x3f   : > { %1534 = vmatmul.mubr.bf16.gmra.mrb[12].mxu0 %v1608_v22  ;;  %1550 = vmatmul.mubr.bf16.gmra.mrb[12].mxu1 %v1616_v23 }
  0xfa   : > { %v1523_v24 = vpop.f32.mrb[0].mxu0  ;;  %v1737_v25 = vpop.f32.mrb[0].mxu1 }
  0xfb   : > { %v604_v26 = vpop.f32.mrb[1].mxu0  ;;  %v1739_v27 = vpop.f32.mrb[1].mxu1  ;;  %v1029_v39 = vmul.f32 %v1523_v24, %v1523_v24 }
  0xfc   : > { %v1524_v28 = vpop.f32.mrb[2].mxu0  ;;  %v1748_v29 = vpop.f32.mrb[2].mxu1  ;;  %v1027_v30 = vmul.f32 %v604_v26, %v604_v26 }
  0xfd   : > { %v1394_v31 = vpack.c.bf16 %v1524_v28, %v1523_v24  ;;  %v607_v32 = vpop.f32.mrb[3].mxu0  ;;  %v1434_v33 = vpack.c.bf16 %v1748_v29, %v1737_v25  ;;  %v1752_v34 = vpop.f32.mrb[3].mxu1  ;;  %v1030_v42 = vmul.f32 %v1524_v28, %v1524_v28 }
  0xfe   : > { %v1389_v35 = vpack.c.bf16 %v607_v32, %v604_v26  ;;  %v990_v36 = vadd.f32 %v607_v32, %v604_v26  ;;  %v1028_v37 = vmul.f32 %v607_v32, %v607_v32  ;;  %v1429_v38 = vpack.c.bf16 %v1752_v34, %v1739_v27 }
  0xff   : > { %1466 = vst [vmem:[%s1746_s20 + $0x8] sm:$0xff] %v1394_v31   ;;  %1474 = vst [vmem:[%s1746_s20 + $0x48] sm:$0xff] %v1434_v33  }
 0x100   : > { %1390 = vst [vmem:[%s1746_s20] sm:$0xff] %v1389_v35   ;;  %v991_v40 = vadd.f32 %v1523_v24, %v990_v36  ;;  %v1059_v41 = vadd.f32 %v1028_v37, %v1027_v30  ;;  %1473 = vst [vmem:[%s1746_s20 + $0x40] sm:$0xff] %v1429_v38  }
 0x102   : > { %v1060_v43 = vadd.f32 %v1059_v41, %v1029_v39  ;;  %v1527_v44 = vpop.f32.mrb[4].mxu0  ;;  %v992_v45 = vadd.f32 %v1524_v28, %v991_v40  ;;  %v1760_v46 = vpop.f32.mrb[4].mxu1 }
 0x103   : > { %v620_v47 = vpop.f32.mrb[5].mxu0  ;;  %v1762_v48 = vpop.f32.mrb[5].mxu1  ;;  %v1033_v63 = vmul.f32 %v1527_v44, %v1527_v44 }
 0x104   : > { %v993_v49 = vadd.f32 %v992_v45, %v620_v47  ;;  %v1031_v50 = vmul.f32 %v620_v47, %v620_v47  ;;  %v1061_v51 = vadd.f32 %v1060_v43, %v1030_v42  ;;  %v1528_v52 = vpop.f32.mrb[6].mxu0  ;;  %v1764_v53 = vpop.f32.mrb[6].mxu1 }
 0x105   : > { %v1404_v54 = vpack.c.bf16 %v1528_v52, %v1527_v44  ;;  %v623_v55 = vpop.f32.mrb[7].mxu0  ;;  %v1444_v56 = vpack.c.bf16 %v1764_v53, %v1760_v46  ;;  %v1768_v57 = vpop.f32.mrb[7].mxu1  ;;  %v1034_v2 = vmul.f32 %v1528_v52, %v1528_v52 }
 0x106   : > { %v1062_v58 = vadd.f32 %v1061_v51, %v1031_v50  ;;  %v1399_v59 = vpack.c.bf16 %v623_v55, %v620_v47  ;;  %v994_v60 = vadd.f32 %v993_v49, %v623_v55  ;;  %v1032_v61 = vmul.f32 %v623_v55, %v623_v55 }
 0x107   : > { %1468 = vst [vmem:[%s1746_s20 + $0x18] sm:$0xff] %v1404_v54   ;;  %1476 = vst [vmem:[%s1746_s20 + $0x58] sm:$0xff] %v1444_v56   ;;  %v1439_v62 = vpack.c.bf16 %v1768_v57, %v1762_v48 }
 0x108   : > { %1467 = vst [vmem:[%s1746_s20 + $0x10] sm:$0xff] %v1399_v59   ;;  %v995_v0 = vadd.f32 %v1527_v44, %v994_v60  ;;  %v1063_v1 = vadd.f32 %v1062_v58, %v1032_v61  ;;  %v1043_v61 = vmul.f32 %v1739_v27, %v1739_v27 }
 0x109   : > { %1475 = vst [vmem:[%s1746_s20 + $0x50] sm:$0xff] %v1439_v62  }
 0x10a   : > { %v1064_v3 = vadd.f32 %v1063_v1, %v1033_v63  ;;  %v1531_v4 = vpop.f32.mrb[8].mxu0  ;;  %v996_v5 = vadd.f32 %v1528_v52, %v995_v0  ;;  %v1776_v6 = vpop.f32.mrb[8].mxu1 }
 0x10b   : > { %v636_v7 = vpop.f32.mrb[9].mxu0  ;;  %v1778_v8 = vpop.f32.mrb[9].mxu1  ;;  %v1037_v23 = vmul.f32 %v1531_v4, %v1531_v4 }
 0x10c   : > { %v997_v9 = vadd.f32 %v996_v5, %v636_v7  ;;  %v1035_v10 = vmul.f32 %v636_v7, %v636_v7  ;;  %v1065_v11 = vadd.f32 %v1064_v3, %v1034_v2  ;;  %v1532_v12 = vpop.f32.mrb[10].mxu0  ;;  %v1780_v13 = vpop.f32.mrb[10].mxu1  ;;  %v1044_v2 = vmul.f32 %v1752_v34, %v1752_v34 }
 0x10d   : > { %v1414_v14 = vpack.c.bf16 %v1532_v12, %v1531_v4  ;;  %v639_v15 = vpop.f32.mrb[11].mxu0  ;;  %v1454_v16 = vpack.c.bf16 %v1780_v13, %v1776_v6  ;;  %v1784_v17 = vpop.f32.mrb[11].mxu1  ;;  %v1038_v28 = vmul.f32 %v1532_v12, %v1532_v12  ;;  %v1045_v3 = vmul.f32 %v1737_v25, %v1737_v25 }
 0x10e   : > { %v1066_v18 = vadd.f32 %v1065_v11, %v1035_v10  ;;  %v1409_v19 = vpack.c.bf16 %v639_v15, %v636_v7  ;;  %v998_v20 = vadd.f32 %v997_v9, %v639_v15  ;;  %v1036_v21 = vmul.f32 %v639_v15, %v639_v15 }
 0x10f   : > { %1470 = vst [vmem:[%s1746_s20 + $0x28] sm:$0xff] %v1414_v14   ;;  %1478 = vst [vmem:[%s1746_s20 + $0x68] sm:$0xff] %v1454_v16   ;;  %v1449_v22 = vpack.c.bf16 %v1784_v17, %v1778_v8  ;;  %v1046_v7 = vmul.f32 %v1748_v29, %v1748_v29  ;;  %v1048_v15 = vmul.f32 %v1768_v57, %v1768_v57 }
 0x110   : > { %1469 = vst [vmem:[%s1746_s20 + $0x20] sm:$0xff] %v1409_v19   ;;  %v999_v24 = vadd.f32 %v1531_v4, %v998_v20  ;;  %v1067_v26 = vadd.f32 %v1066_v18, %v1036_v21 }
 0x111   : > { %1477 = vst [vmem:[%s1746_s20 + $0x60] sm:$0xff] %v1449_v22  }
 0x112   : > { %v1068_v30 = vadd.f32 %v1067_v26, %v1037_v23  ;;  %v1535_v31 = vpop.f32.mrb[12].mxu0  ;;  %v1000_v32 = vadd.f32 %v1532_v12, %v999_v24  ;;  %v1792_v33 = vpop.f32.mrb[12].mxu1  ;;  %v1052_v24 = vmul.f32 %v1784_v17, %v1784_v17 }
 0x113   : > { %v652_v35 = vpop.f32.mrb[13].mxu0  ;;  %v716_v36 = vpop.f32.mrb[13].mxu1  ;;  %v1041_v54 = vmul.f32 %v1535_v31, %v1535_v31 }
 0x114   : > { %v1001_v37 = vadd.f32 %v1000_v32, %v652_v35  ;;  %v1039_v38 = vmul.f32 %v652_v35, %v652_v35  ;;  %v1069_v39 = vadd.f32 %v1068_v30, %v1038_v28  ;;  %v1536_v40 = vpop.f32.mrb[14].mxu0  ;;  %v1794_v41 = vpop.f32.mrb[14].mxu1 }
 0x115   : > { %v1424_v42 = vpack.c.bf16 %v1536_v40, %v1535_v31  ;;  %v655_v43 = vpop.f32.mrb[15].mxu0  ;;  %v1464_v44 = vpack.c.bf16 %v1794_v41, %v1792_v33  ;;  %v719_v45 = vpop.f32.mrb[15].mxu1  ;;  %v1042_v58 = vmul.f32 %v1536_v40, %v1536_v40 }
 0x116   : > { %v1070_v47 = vadd.f32 %v1069_v39, %v1039_v38  ;;  %v1419_v49 = vpack.c.bf16 %v655_v43, %v652_v35  ;;  %v1002_v50 = vadd.f32 %v1001_v37, %v655_v43  ;;  %v1040_v51 = vmul.f32 %v655_v43, %v655_v43 }
 0x117   : > { %1472 = vst [vmem:[%s1746_s20 + $0x38] sm:$0xff] %v1424_v42   ;;  %1480 = vst [vmem:[%s1746_s20 + $0x78] sm:$0xff] %v1464_v44   ;;  %v1459_v52 = vpack.c.bf16 %v719_v45, %v716_v36  ;;  %v1057_v39 = vmul.f32 %v1792_v33, %v1792_v33  ;;  %v1058_v42 = vmul.f32 %v1794_v41, %v1794_v41 }
 0x118   : > { %1471 = vst [vmem:[%s1746_s20 + $0x30] sm:$0xff] %v1419_v49   ;;  %v1003_v55 = vadd.f32 %v1535_v31, %v1002_v50  ;;  %v1071_v56 = vadd.f32 %v1070_v47, %v1040_v51  ;;  %v1055_v31 = vmul.f32 %v716_v36, %v716_v36  ;;  %v1096_v47 = vlaneseq }
 0x119   : > { %1479 = vst [vmem:[%s1746_s20 + $0x70] sm:$0xff] %v1459_v52  }
 0x11a   : > { %v1072_v59 = vadd.f32 %v1071_v56, %v1041_v54  ;;  %v1004_v60 = vadd.f32 %v1536_v40, %v1003_v55  ;;  %v1097_v52 = vshrl.u32 %v1096_v47, 7 }
 0x11c   : > { %v1005_v62 = vadd.f32 %v1004_v60, %v1739_v27  ;;  %v1073_v63 = vadd.f32 %v1072_v59, %v1042_v58  ;;  %v1047_v27 = vmul.f32 %v1762_v48, %v1762_v48  ;;  %vm1098_vm0 = vcmp.eq.s32.totalorder %v1097_v52, 0 }
 0x11e   : > { %v1074_v0 = vadd.f32 %v1073_v63, %v1043_v61  ;;  %v1006_v1 = vadd.f32 %v1005_v62, %v1752_v34 }
 0x120   : > { %v1007_v4 = vadd.f32 %v1737_v25, %v1006_v1  ;;  %v1075_v5 = vadd.f32 %v1074_v0, %v1044_v2  ;;  %v1049_v25 = vmul.f32 %v1760_v46, %v1760_v46 }
 0x122   : > { %v1076_v9 = vadd.f32 %v1075_v5, %v1045_v3  ;;  %v1008_v10 = vadd.f32 %v1748_v29, %v1007_v4  ;;  %v1050_v29 = vmul.f32 %v1764_v53, %v1764_v53 }
 0x124   : > { %v1009_v11 = vadd.f32 %v1008_v10, %v1762_v48  ;;  %v1077_v12 = vadd.f32 %v1076_v9, %v1046_v7  ;;  %v1051_v48 = vmul.f32 %v1778_v8, %v1778_v8 }
 0x126   : > { %v1078_v14 = vadd.f32 %v1077_v12, %v1047_v27  ;;  %v1010_v34 = vadd.f32 %v1009_v11, %v1768_v57 }
 0x128   : > { %v1011_v16 = vadd.f32 %v1760_v46, %v1010_v34  ;;  %v1079_v18 = vadd.f32 %v1078_v14, %v1048_v15  ;;  %v1053_v46 = vmul.f32 %v1776_v6, %v1776_v6 }
 0x12a   : > { %v1080_v19 = vadd.f32 %v1079_v18, %v1049_v25  ;;  %v1012_v20 = vadd.f32 %v1764_v53, %v1011_v16  ;;  %v1054_v53 = vmul.f32 %v1780_v13, %v1780_v13 }
 0x12c   : > { %v1013_v21 = vadd.f32 %v1012_v20, %v1778_v8  ;;  %v1081_v22 = vadd.f32 %v1080_v19, %v1050_v29 }
 0x12e   : > { %v1082_v23 = vadd.f32 %v1081_v22, %v1051_v48  ;;  %v1014_v57 = vadd.f32 %v1013_v21, %v1784_v17  ;;  %v1056_v17 = vmul.f32 %v719_v45, %v719_v45 }
 0x130   : > { %v1015_v26 = vadd.f32 %v1776_v6, %v1014_v57  ;;  %v1083_v28 = vadd.f32 %v1082_v23, %v1052_v24 }
 0x132   : > { %v1084_v30 = vadd.f32 %v1083_v28, %v1053_v46  ;;  %v1016_v8 = vadd.f32 %v1780_v13, %v1015_v26 }
 0x134   : > { %v1017_v32 = vadd.f32 %v1016_v8, %v716_v36  ;;  %v1085_v35 = vadd.f32 %v1084_v30, %v1054_v53 }
 0x136   : > { %v1086_v37 = vadd.f32 %v1085_v35, %v1055_v31  ;;  %v1018_v38 = vadd.f32 %v1017_v32, %v719_v45 }
 0x138   : > { %v1019_v6 = vadd.f32 %v1792_v33, %v1018_v38  ;;  %v1087_v40 = vadd.f32 %v1086_v37, %v1056_v17 }
 0x13a   : > { %v1020_v43 = vadd.f32 %v1794_v41, %v1019_v6  ;;  %v1088_v44 = vadd.f32 %v1087_v40, %v1057_v39 }
 0x13c   : > { %v1021_v13 = vrot.slane %v1020_v43, 4  ;;  %v1089_v36 = vadd.f32 %v1088_v44, %v1058_v42 }
 0x13e   : > { %v1022_v49 = vadd.f32 %v1021_v13, %v1020_v43  ;;  %v1090_v50 = vrot.slane %v1089_v36, 4 }
 0x140   : > { %v1023_v45 = vrot.slane %v1022_v49, 2  ;;  %v1091_v51 = vadd.f32 %v1090_v50, %v1089_v36 }
 0x142   : > { %v1024_v54 = vadd.f32 %v1023_v45, %v1022_v49  ;;  %v1092_v55 = vrot.slane %v1091_v51, 2 }
 0x144   : > { %v1025_v33 = vrot.slane %v1024_v54, 1  ;;  %v1093_v56 = vadd.f32 %v1092_v55, %v1091_v51 }
 0x146   : > { %v1026_v41 = vadd.f32 %v1025_v33, %v1024_v54  ;;  %v1094_v58 = vrot.slane %v1093_v56, 1 }
 0x148   : > { %v1095_v59 = vadd.f32 %v1094_v58, %v1093_v56  ;;  %v1099_v60 = vsel %vm1098_vm0, %v1026_v41, 0.0 }
 0x149   : > { %1100 = vst [vmem:[%s301_s24] sm:$0xff] %v1099_v60 }
 0x14a   : > { %v1101_v61 = vsel %vm1098_vm0, %v1095_v59, 0.0 }
 0x14b   : > { %1102 = vst [vmem:[%s308_s27] sm:$0xff] %v1101_v61 }
 0x14c PF: > { %s15_s17 = sadd.s32 1, %s1639_s17   ;;  %s1866_s15 = smov %s1635_s16 }
 0x14d   : > { %p12_p6 = scmp.ge.s32.totalorder %s15_s17, 4   ;;  %s1867_s16 = smov %s1869_s18 }
 0x14f   :  { %14 = sbr.rel (!%p12_p6) target bundleno = 2 (0x2), region = 93 }

// kernel: basic_block_forward.7
= control target key start
LH: loop header
LB: loop body
LE: loop exit
PB: predicated region body
PF: predicated region fallthrough
CT: control target
= control target key end

     0   :  { %s1478_s0 = inlined_call_operand.vmem [shape: bf16[512,128], index: 0, kind: input, shape index: {}]   ;;  %s1479_s1 = inlined_call_operand.vmem [shape: f32[1,128], index: 1, kind: input, shape index: {}]   ;;  %s1480_s2 = inlined_call_operand.vmem [shape: f32[1,128], index: 2, kind: input, shape index: {}]   ;;  %s1481_s3 = inlined_call_operand.vmem [shape: bf16[512,128], index: 3, kind: input, shape index: {}]   ;;  %s1482_s4 = inlined_call_operand.vmem [shape: f32[512,128], index: 4, kind: output, shape index: {}]  }
   0x1   :  { %v614_v0 = vld [vmem:[%s1478_s0] sm:$0xff]   ;;  %v869_v5 = vld [vmem:[%s1478_s0 + $0x8] sm:$0xff]   ;;  %v870_v12 = vld [vmem:[%s1478_s0 + $0x10] sm:$0xff]  }
   0x2   :  { %v962_v1 = vld [vmem:[%s1479_s1] ss:$0 sm:$0xff]  ;;  %v615_v2 = vunpack.c.l.bf16 %v614_v0  ;;  %v616_v4 = vunpack.c.h.bf16 %v614_v0  ;;  %v900_v6 = vld [vmem:[%s1481_s3 + $0x8] sm:$0xff]   ;;  %v619_v10 = vunpack.c.l.bf16 %v869_v5  ;;  %v901_v13 = vld [vmem:[%s1481_s3 + $0x10] sm:$0xff]   ;;  %v620_v16 = vunpack.c.h.bf16 %v869_v5 }
   0x3   :  { %v742_v3 = vld [vmem:[%s1481_s3] sm:$0xff]   ;;  %v747_v11 = vunpack.c.l.bf16 %v900_v6  ;;  %v748_v17 = vunpack.c.h.bf16 %v900_v6  ;;  %v871_v18 = vld [vmem:[%s1478_s0 + $0x18] sm:$0xff]   ;;  %v623_v20 = vunpack.c.l.bf16 %v870_v12  ;;  %v751_v21 = vunpack.c.l.bf16 %v901_v13  ;;  %v873_v54 = vld [vmem:[%s1478_s0 + $0x28] sm:$0xff]  }
   0x4   :  { %v976_v7 = vld [vmem:[%s1480_s2] ss:$0 sm:$0xff]  ;;  %v743_v8 = vunpack.c.l.bf16 %v742_v3  ;;  %v744_v9 = vunpack.c.h.bf16 %v742_v3  ;;  %v281_v14 = vmul.f32 %v615_v2, %v962_v1  ;;  %v282_v15 = vmul.f32 %v616_v4, %v962_v1  ;;  %v902_v23 = vld [vmem:[%s1481_s3 + $0x18] sm:$0xff]   ;;  %v904_v55 = vld [vmem:[%s1481_s3 + $0x28] sm:$0xff]  }
   0x5   :  { %v283_v19 = vmul.f32 %v619_v10, %v962_v1  ;;  %v624_v22 = vunpack.c.h.bf16 %v870_v12  ;;  %v284_v26 = vmul.f32 %v620_v16, %v962_v1  ;;  %v752_v27 = vunpack.c.h.bf16 %v901_v13  ;;  %v872_v40 = vld [vmem:[%s1478_s0 + $0x20] sm:$0xff]   ;;  %v874_v0 = vld [vmem:[%s1478_s0 + $0x30] sm:$0xff]   ;;  %v875_v16 = vld [vmem:[%s1478_s0 + $0x38] sm:$0xff]  }
   0x6   :  { %v351_v24 = vadd.f32 %v976_v7, %v281_v14  ;;  %v352_v25 = vadd.f32 %v976_v7, %v282_v15  ;;  %v285_v29 = vmul.f32 %v623_v20, %v962_v1  ;;  %v627_v31 = vunpack.c.l.bf16 %v871_v18  ;;  %v903_v45 = vld [vmem:[%s1481_s3 + $0x20] sm:$0xff]   ;;  %v905_v2 = vld [vmem:[%s1481_s3 + $0x30] sm:$0xff]  }
   0x7   :  { %v353_v28 = vadd.f32 %v976_v7, %v283_v19  ;;  %v286_v30 = vmul.f32 %v624_v22, %v962_v1  ;;  %v354_v34 = vadd.f32 %v976_v7, %v284_v26  ;;  %v755_v35 = vunpack.c.l.bf16 %v902_v23 }
   0x8   :  { %v415_v32 = vadd.f32 %v743_v8, %v351_v24  ;;  %v416_v33 = vadd.f32 %v744_v9, %v352_v25  ;;  %v355_v37 = vadd.f32 %v976_v7, %v285_v29  ;;  %v287_v39 = vmul.f32 %v627_v31, %v962_v1 }
   0x9   :  { %v417_v36 = vadd.f32 %v747_v11, %v353_v28  ;;  %v356_v38 = vadd.f32 %v976_v7, %v286_v30  ;;  %v418_v43 = vadd.f32 %v748_v17, %v354_v34  ;;  %v628_v44 = vunpack.c.h.bf16 %v871_v18  ;;  %v876_v34 = vld [vmem:[%s1478_s0 + $0x40] sm:$0xff]  }
   0xa   :  { %v479_v41 = vmax.f32 %v415_v32, 0.0  ;;  %v480_v42 = vmax.f32 %v416_v33, 0.0  ;;  %v419_v47 = vadd.f32 %v751_v21, %v355_v37  ;;  %v357_v49 = vadd.f32 %v976_v7, %v287_v39  ;;  %v906_v21 = vld [vmem:[%s1481_s3 + $0x38] sm:$0xff]   ;;  %v907_v39 = vld [vmem:[%s1481_s3 + $0x40] sm:$0xff]  }
   0xb   :  { %v481_v46 = vmax.f32 %v417_v36, 0.0  ;;  %v420_v48 = vadd.f32 %v752_v27, %v356_v38  ;;  %v482_v50 = vmax.f32 %v418_v43, 0.0  ;;  %v756_v51 = vunpack.c.h.bf16 %v902_v23 }
   0xc   :  { %543 = vst [vmem:[%s1482_s4] sm:$0xff] %v479_v41  ;;  %544 = vst [vmem:[%s1482_s4 + $0x8] sm:$0xff] %v480_v42  ;;  %v288_v52 = vmul.f32 %v628_v44, %v962_v1  ;;  %v631_v53 = vunpack.c.l.bf16 %v872_v40  ;;  %v483_v56 = vmax.f32 %v419_v47, 0.0  ;;  %v421_v58 = vadd.f32 %v755_v35, %v357_v49  ;;  %v908_v49 = vld [vmem:[%s1481_s3 + $0x48] sm:$0xff]  }
   0xd   :  { %545 = vst [vmem:[%s1482_s4 + $0x10] sm:$0xff] %v481_v46  ;;  %v484_v57 = vmax.f32 %v420_v48, 0.0  ;;  %v759_v59 = vunpack.c.l.bf16 %v903_v45  ;;  %546 = vst [vmem:[%s1482_s4 + $0x18] sm:$0xff] %v482_v50  ;;  %v632_v62 = vunpack.c.h.bf16 %v872_v40  ;;  %v760_v63 = vunpack.c.h.bf16 %v903_v45  ;;  %v877_v48 = vld [vmem:[%s1478_s0 + $0x48] sm:$0xff]  }
   0xe   :  { %v358_v60 = vadd.f32 %v976_v7, %v288_v52  ;;  %v289_v61 = vmul.f32 %v631_v53, %v962_v1  ;;  %547 = vst [vmem:[%s1482_s4 + $0x20] sm:$0xff] %v483_v56  ;;  %v485_v3 = vmax.f32 %v421_v58, 0.0  ;;  %v635_v4 = vunpack.c.l.bf16 %v873_v54  ;;  %v878_v58 = vld [vmem:[%s1478_s0 + $0x50] sm:$0xff]  }
   0xf   :  { %548 = vst [vmem:[%s1482_s4 + $0x28] sm:$0xff] %v484_v57  ;;  %v763_v5 = vunpack.c.l.bf16 %v904_v55  ;;  %v636_v6 = vunpack.c.h.bf16 %v873_v54  ;;  %v290_v10 = vmul.f32 %v632_v62, %v962_v1  ;;  %v764_v11 = vunpack.c.h.bf16 %v904_v55 }
  0x10   :  { %v422_v8 = vadd.f32 %v756_v51, %v358_v60  ;;  %v359_v9 = vadd.f32 %v976_v7, %v289_v61  ;;  %549 = vst [vmem:[%s1482_s4 + $0x30] sm:$0xff] %v485_v3  ;;  %v291_v12 = vmul.f32 %v635_v4, %v962_v1  ;;  %v639_v14 = vunpack.c.l.bf16 %v874_v0 }
  0x11   :  { %v292_v13 = vmul.f32 %v636_v6, %v962_v1  ;;  %v767_v15 = vunpack.c.l.bf16 %v905_v2  ;;  %v360_v19 = vadd.f32 %v976_v7, %v290_v10  ;;  %v640_v20 = vunpack.c.h.bf16 %v874_v0  ;;  %v879_v10 = vld [vmem:[%s1478_s0 + $0x58] sm:$0xff]  }
  0x12   :  { %v486_v17 = vmax.f32 %v422_v8, 0.0  ;;  %v423_v18 = vadd.f32 %v759_v59, %v359_v9  ;;  %v361_v22 = vadd.f32 %v976_v7, %v291_v12  ;;  %v293_v24 = vmul.f32 %v639_v14, %v962_v1 }
  0x13   :  { %v362_v23 = vadd.f32 %v976_v7, %v292_v13  ;;  %v768_v25 = vunpack.c.h.bf16 %v905_v2  ;;  %v424_v27 = vadd.f32 %v760_v63, %v360_v19  ;;  %v294_v28 = vmul.f32 %v640_v20, %v962_v1  ;;  %v909_v63 = vld [vmem:[%s1481_s3 + $0x50] sm:$0xff]   ;;  %v910_v19 = vld [vmem:[%s1481_s3 + $0x58] sm:$0xff]  }
  0x14   :  { %550 = vst [vmem:[%s1482_s4 + $0x38] sm:$0xff] %v486_v17  ;;  %v487_v26 = vmax.f32 %v423_v18, 0.0  ;;  %v643_v29 = vunpack.c.l.bf16 %v875_v16  ;;  %v425_v30 = vadd.f32 %v763_v5, %v361_v22  ;;  %v363_v32 = vadd.f32 %v976_v7, %v293_v24 }
  0x15   :  { %v426_v31 = vadd.f32 %v764_v11, %v362_v23  ;;  %v771_v33 = vunpack.c.l.bf16 %v906_v21  ;;  %v488_v35 = vmax.f32 %v424_v27, 0.0  ;;  %v364_v36 = vadd.f32 %v976_v7, %v294_v28  ;;  %v880_v28 = vld [vmem:[%s1478_s0 + $0x60] sm:$0xff]  }
  0x16   :  { %551 = vst [vmem:[%s1482_s4 + $0x40] sm:$0xff] %v487_v26  ;;  %v295_v37 = vmul.f32 %v643_v29, %v962_v1  ;;  %v644_v38 = vunpack.c.h.bf16 %v875_v16  ;;  %v489_v40 = vmax.f32 %v425_v30, 0.0  ;;  %v427_v42 = vadd.f32 %v767_v15, %v363_v32 }
  0x17   :  { %v490_v41 = vmax.f32 %v426_v31, 0.0  ;;  %v772_v43 = vunpack.c.h.bf16 %v906_v21  ;;  %552 = vst [vmem:[%s1482_s4 + $0x48] sm:$0xff] %v488_v35  ;;  %v428_v44 = vadd.f32 %v768_v25, %v364_v36  ;;  %v647_v47 = vunpack.c.l.bf16 %v876_v34 }
  0x18   :  { %v365_v45 = vadd.f32 %v976_v7, %v295_v37  ;;  %v296_v46 = vmul.f32 %v644_v38, %v962_v1  ;;  %553 = vst [vmem:[%s1482_s4 + $0x50] sm:$0xff] %v489_v40  ;;  %v491_v50 = vmax.f32 %v427_v42, 0.0  ;;  %v775_v51 = vunpack.c.l.bf16 %v907_v39  ;;  %v881_v42 = vld [vmem:[%s1478_s0 + $0x68] sm:$0xff]  }
  0x19   :  { %554 = vst [vmem:[%s1482_s4 + $0x58] sm:$0xff] %v490_v41  ;;  %v648_v52 = vunpack.c.h.bf16 %v876_v34  ;;  %v776_v53 = vunpack.c.h.bf16 %v907_v39  ;;  %v492_v54 = vmax.f32 %v428_v44, 0.0  ;;  %v297_v57 = vmul.f32 %v647_v47, %v962_v1 }
  0x1a   :  { %v429_v55 = vadd.f32 %v771_v33, %v365_v45  ;;  %v366_v56 = vadd.f32 %v976_v7, %v296_v46  ;;  %555 = vst [vmem:[%s1482_s4 + $0x60] sm:$0xff] %v491_v50  ;;  %v651_v60 = vunpack.c.l.bf16 %v877_v48  ;;  %v779_v61 = vunpack.c.l.bf16 %v908_v49  ;;  %v911_v33 = vld [vmem:[%s1481_s3 + $0x60] sm:$0xff]  }
  0x1b   :  { %v298_v59 = vmul.f32 %v648_v52, %v962_v1  ;;  %v652_v62 = vunpack.c.h.bf16 %v877_v48  ;;  %556 = vst [vmem:[%s1482_s4 + $0x68] sm:$0xff] %v492_v54  ;;  %v367_v3 = vadd.f32 %v976_v7, %v297_v57  ;;  %v780_v4 = vunpack.c.h.bf16 %v908_v49  ;;  %v882_v52 = vld [vmem:[%s1478_s0 + $0x70] sm:$0xff]  }
  0x1c   :  { %v493_v0 = vmax.f32 %v429_v55, 0.0  ;;  %v430_v2 = vadd.f32 %v772_v43, %v366_v56  ;;  %v299_v6 = vmul.f32 %v651_v60, %v962_v1  ;;  %v655_v9 = vunpack.c.l.bf16 %v878_v58  ;;  %v912_v43 = vld [vmem:[%s1481_s3 + $0x68] sm:$0xff]   ;;  %v913_v57 = vld [vmem:[%s1481_s3 + $0x70] sm:$0xff]  }
  0x1d   :  { %v368_v5 = vadd.f32 %v976_v7, %v298_v59  ;;  %v300_v8 = vmul.f32 %v652_v62, %v962_v1  ;;  %v431_v12 = vadd.f32 %v775_v51, %v367_v3  ;;  %v783_v13 = vunpack.c.l.bf16 %v909_v63  ;;  %v883_v3 = vld [vmem:[%s1478_s0 + $0x78] sm:$0xff]  }
  0x1e   :  { %557 = vst [vmem:[%s1482_s4 + $0x70] sm:$0xff] %v493_v0  ;;  %v494_v11 = vmax.f32 %v430_v2, 0.0  ;;  %v656_v14 = vunpack.c.h.bf16 %v878_v58  ;;  %v369_v16 = vadd.f32 %v976_v7, %v299_v6  ;;  %v301_v18 = vmul.f32 %v655_v9, %v962_v1 }
  0x1f   :  { %v432_v15 = vadd.f32 %v776_v53, %v368_v5  ;;  %v370_v17 = vadd.f32 %v976_v7, %v300_v8  ;;  %v495_v20 = vmax.f32 %v431_v12, 0.0  ;;  %v784_v21 = vunpack.c.h.bf16 %v909_v63 }
  0x20   :  { %558 = vst [vmem:[%s1482_s4 + $0x78] sm:$0xff] %v494_v11  ;;  %v302_v22 = vmul.f32 %v656_v14, %v962_v1  ;;  %v659_v23 = vunpack.c.l.bf16 %v879_v10  ;;  %v433_v25 = vadd.f32 %v779_v61, %v369_v16  ;;  %v371_v27 = vadd.f32 %v976_v7, %v301_v18 }
  0x21   :  { %v496_v24 = vmax.f32 %v432_v15, 0.0  ;;  %v434_v26 = vadd.f32 %v780_v4, %v370_v17  ;;  %559 = vst [vmem:[%s1482_s4 + $0x80] sm:$0xff] %v495_v20  ;;  %v787_v30 = vunpack.c.l.bf16 %v910_v19  ;;  %v660_v32 = vunpack.c.h.bf16 %v879_v10 }
  0x22   :  { %v372_v29 = vadd.f32 %v976_v7, %v302_v22  ;;  %v303_v31 = vmul.f32 %v659_v23, %v962_v1  ;;  %v497_v34 = vmax.f32 %v433_v25, 0.0  ;;  %v435_v36 = vadd.f32 %v783_v13, %v371_v27  ;;  %v914_v13 = vld [vmem:[%s1481_s3 + $0x78] sm:$0xff]   ;;  %v884_v22 = vld [vmem:[%s1478_s0 + $0x80] sm:$0xff]  }
  0x23   :  { %560 = vst [vmem:[%s1482_s4 + $0x88] sm:$0xff] %v496_v24  ;;  %v498_v35 = vmax.f32 %v434_v26, 0.0  ;;  %v788_v37 = vunpack.c.h.bf16 %v910_v19  ;;  %v304_v40 = vmul.f32 %v660_v32, %v962_v1  ;;  %v663_v41 = vunpack.c.l.bf16 %v880_v28  ;;  %v915_v27 = vld [vmem:[%s1481_s3 + $0x80] sm:$0xff]  }
  0x24   :  { %v436_v38 = vadd.f32 %v784_v21, %v372_v29  ;;  %v373_v39 = vadd.f32 %v976_v7, %v303_v31  ;;  %561 = vst [vmem:[%s1482_s4 + $0x90] sm:$0xff] %v497_v34  ;;  %v499_v44 = vmax.f32 %v435_v36, 0.0  ;;  %v791_v45 = vunpack.c.l.bf16 %v911_v33  ;;  %v885_v36 = vld [vmem:[%s1478_s0 + $0x88] sm:$0xff]  }
  0x25   :  { %562 = vst [vmem:[%s1482_s4 + $0x98] sm:$0xff] %v498_v35  ;;  %v664_v46 = vunpack.c.h.bf16 %v880_v28  ;;  %v792_v47 = vunpack.c.h.bf16 %v911_v33  ;;  %v374_v50 = vadd.f32 %v976_v7, %v304_v40  ;;  %v305_v51 = vmul.f32 %v663_v41, %v962_v1 }
  0x26   :  { %v500_v48 = vmax.f32 %v436_v38, 0.0  ;;  %v437_v49 = vadd.f32 %v787_v30, %v373_v39  ;;  %563 = vst [vmem:[%s1482_s4 + $0xa0] sm:$0xff] %v499_v44  ;;  %v667_v54 = vunpack.c.l.bf16 %v881_v42  ;;  %v795_v55 = vunpack.c.l.bf16 %v912_v43 }
  0x27   :  { %v306_v53 = vmul.f32 %v664_v46, %v962_v1  ;;  %v668_v56 = vunpack.c.h.bf16 %v881_v42  ;;  %v438_v59 = vadd.f32 %v788_v37, %v374_v50  ;;  %v375_v60 = vadd.f32 %v976_v7, %v305_v51  ;;  %v916_v37 = vld [vmem:[%s1481_s3 + $0x88] sm:$0xff]   ;;  %v886_v46 = vld [vmem:[%s1478_s0 + $0x90] sm:$0xff]  }
  0x28   :  { %564 = vst [vmem:[%s1482_s4 + $0xa8] sm:$0xff] %v500_v48  ;;  %v501_v58 = vmax.f32 %v437_v49, 0.0  ;;  %v796_v61 = vunpack.c.h.bf16 %v912_v43  ;;  %v307_v63 = vmul.f32 %v667_v54, %v962_v1  ;;  %v671_v2 = vunpack.c.l.bf16 %v882_v52  ;;  %v917_v51 = vld [vmem:[%s1481_s3 + $0x90] sm:$0xff]  }
  0x29   :  { %v376_v62 = vadd.f32 %v976_v7, %v306_v53  ;;  %v308_v0 = vmul.f32 %v668_v56, %v962_v1  ;;  %v502_v4 = vmax.f32 %v438_v59, 0.0  ;;  %v439_v5 = vadd.f32 %v791_v45, %v375_v60  ;;  %v887_v60 = vld [vmem:[%s1478_s0 + $0x98] sm:$0xff]  }
  0x2a   :  { %565 = vst [vmem:[%s1482_s4 + $0xb0] sm:$0xff] %v501_v58  ;;  %v799_v6 = vunpack.c.l.bf16 %v913_v57  ;;  %v672_v8 = vunpack.c.h.bf16 %v882_v52  ;;  %v377_v10 = vadd.f32 %v976_v7, %v307_v63  ;;  %v309_v12 = vmul.f32 %v671_v2, %v962_v1 }
  0x2b   :  { %v440_v9 = vadd.f32 %v792_v47, %v376_v62  ;;  %v378_v11 = vadd.f32 %v976_v7, %v308_v0  ;;  %566 = vst [vmem:[%s1482_s4 + $0xb8] sm:$0xff] %v502_v4  ;;  %v503_v14 = vmax.f32 %v439_v5, 0.0  ;;  %v800_v15 = vunpack.c.h.bf16 %v913_v57 }
  0x2c   :  { %v310_v16 = vmul.f32 %v672_v8, %v962_v1  ;;  %v675_v17 = vunpack.c.l.bf16 %v883_v3  ;;  %v441_v19 = vadd.f32 %v795_v55, %v377_v10  ;;  %v379_v21 = vadd.f32 %v976_v7, %v309_v12 }
  0x2d   :  { %v504_v18 = vmax.f32 %v440_v9, 0.0  ;;  %v442_v20 = vadd.f32 %v796_v61, %v378_v11  ;;  %567 = vst [vmem:[%s1482_s4 + $0xc0] sm:$0xff] %v503_v14  ;;  %v803_v24 = vunpack.c.l.bf16 %v914_v13  ;;  %v676_v26 = vunpack.c.h.bf16 %v883_v3 }
  0x2e   :  { %v380_v23 = vadd.f32 %v976_v7, %v310_v16  ;;  %v311_v25 = vmul.f32 %v675_v17, %v962_v1  ;;  %v505_v28 = vmax.f32 %v441_v19, 0.0  ;;  %v443_v30 = vadd.f32 %v799_v6, %v379_v21  ;;  %v918_v6 = vld [vmem:[%s1481_s3 + $0x98] sm:$0xff]   ;;  %v888_v16 = vld [vmem:[%s1478_s0 + $0xa0] sm:$0xff]  }
  0x2f   :  { %568 = vst [vmem:[%s1482_s4 + $0xc8] sm:$0xff] %v504_v18  ;;  %v506_v29 = vmax.f32 %v442_v20, 0.0  ;;  %v804_v31 = vunpack.c.h.bf16 %v914_v13  ;;  %v312_v34 = vmul.f32 %v676_v26, %v962_v1  ;;  %v679_v35 = vunpack.c.l.bf16 %v884_v22  ;;  %v919_v21 = vld [vmem:[%s1481_s3 + $0xa0] sm:$0xff]  }
  0x30   :  { %v444_v32 = vadd.f32 %v800_v15, %v380_v23  ;;  %v381_v33 = vadd.f32 %v976_v7, %v311_v25  ;;  %569 = vst [vmem:[%s1482_s4 + $0xd0] sm:$0xff] %v505_v28  ;;  %v507_v38 = vmax.f32 %v443_v30, 0.0  ;;  %v807_v39 = vunpack.c.l.bf16 %v915_v27  ;;  %v889_v30 = vld [vmem:[%s1478_s0 + $0xa8] sm:$0xff]  }
  0x31   :  { %570 = vst [vmem:[%s1482_s4 + $0xd8] sm:$0xff] %v506_v29  ;;  %v680_v40 = vunpack.c.h.bf16 %v884_v22  ;;  %v808_v41 = vunpack.c.h.bf16 %v915_v27  ;;  %v382_v44 = vadd.f32 %v976_v7, %v312_v34  ;;  %v313_v45 = vmul.f32 %v679_v35, %v962_v1 }
  0x32   :  { %v508_v42 = vmax.f32 %v444_v32, 0.0  ;;  %v445_v43 = vadd.f32 %v803_v24, %v381_v33  ;;  %571 = vst [vmem:[%s1482_s4 + $0xe0] sm:$0xff] %v507_v38  ;;  %v683_v48 = vunpack.c.l.bf16 %v885_v36  ;;  %v811_v49 = vunpack.c.l.bf16 %v916_v37 }
  0x33   :  { %v314_v47 = vmul.f32 %v680_v40, %v962_v1  ;;  %v684_v50 = vunpack.c.h.bf16 %v885_v36  ;;  %v446_v53 = vadd.f32 %v804_v31, %v382_v44  ;;  %v383_v54 = vadd.f32 %v976_v7, %v313_v45  ;;  %v920_v31 = vld [vmem:[%s1481_s3 + $0xa8] sm:$0xff]   ;;  %v890_v40 = vld [vmem:[%s1478_s0 + $0xb0] sm:$0xff]  }
  0x34   :  { %572 = vst [vmem:[%s1482_s4 + $0xe8] sm:$0xff] %v508_v42  ;;  %v509_v52 = vmax.f32 %v445_v43, 0.0  ;;  %v812_v55 = vunpack.c.h.bf16 %v916_v37  ;;  %v315_v57 = vmul.f32 %v683_v48, %v962_v1  ;;  %v687_v59 = vunpack.c.l.bf16 %v886_v46  ;;  %v921_v45 = vld [vmem:[%s1481_s3 + $0xb0] sm:$0xff]  }
  0x35   :  { %v384_v56 = vadd.f32 %v976_v7, %v314_v47  ;;  %v316_v58 = vmul.f32 %v684_v50, %v962_v1  ;;  %v510_v61 = vmax.f32 %v446_v53, 0.0  ;;  %v447_v62 = vadd.f32 %v807_v39, %v383_v54  ;;  %v891_v54 = vld [vmem:[%s1478_s0 + $0xb8] sm:$0xff]  }
  0x36   :  { %573 = vst [vmem:[%s1482_s4 + $0xf0] sm:$0xff] %v509_v52  ;;  %v815_v63 = vunpack.c.l.bf16 %v917_v51  ;;  %v688_v0 = vunpack.c.h.bf16 %v886_v46  ;;  %v385_v3 = vadd.f32 %v976_v7, %v315_v57  ;;  %v317_v5 = vmul.f32 %v687_v59, %v962_v1 }
  0x37   :  { %v448_v2 = vadd.f32 %v808_v41, %v384_v56  ;;  %v386_v4 = vadd.f32 %v976_v7, %v316_v58  ;;  %574 = vst [vmem:[%s1482_s4 + $0xf8] sm:$0xff] %v510_v61  ;;  %v511_v8 = vmax.f32 %v447_v62, 0.0  ;;  %v816_v9 = vunpack.c.h.bf16 %v917_v51 }
  0x38   :  { %v318_v10 = vmul.f32 %v688_v0, %v962_v1  ;;  %v691_v11 = vunpack.c.l.bf16 %v887_v60  ;;  %v449_v13 = vadd.f32 %v811_v49, %v385_v3  ;;  %v387_v15 = vadd.f32 %v976_v7, %v317_v5 }
  0x39   :  { %v512_v12 = vmax.f32 %v448_v2, 0.0  ;;  %v450_v14 = vadd.f32 %v812_v55, %v386_v4  ;;  %575 = vst [vmem:[%s1482_s4 + $0x100] sm:$0xff] %v511_v8  ;;  %v819_v18 = vunpack.c.l.bf16 %v918_v6  ;;  %v692_v20 = vunpack.c.h.bf16 %v887_v60 }
  0x3a   :  { %v388_v17 = vadd.f32 %v976_v7, %v318_v10  ;;  %v319_v19 = vmul.f32 %v691_v11, %v962_v1  ;;  %v513_v22 = vmax.f32 %v449_v13, 0.0  ;;  %v451_v24 = vadd.f32 %v815_v63, %v387_v15  ;;  %v922_v63 = vld [vmem:[%s1481_s3 + $0xb8] sm:$0xff]   ;;  %v892_v10 = vld [vmem:[%s1478_s0 + $0xc0] sm:$0xff]  }
  0x3b   :  { %576 = vst [vmem:[%s1482_s4 + $0x108] sm:$0xff] %v512_v12  ;;  %v514_v23 = vmax.f32 %v450_v14, 0.0  ;;  %v820_v25 = vunpack.c.h.bf16 %v918_v6  ;;  %v320_v28 = vmul.f32 %v692_v20, %v962_v1  ;;  %v695_v29 = vunpack.c.l.bf16 %v888_v16  ;;  %v923_v15 = vld [vmem:[%s1481_s3 + $0xc0] sm:$0xff]  }
  0x3c   :  { %v452_v26 = vadd.f32 %v816_v9, %v388_v17  ;;  %v389_v27 = vadd.f32 %v976_v7, %v319_v19  ;;  %577 = vst [vmem:[%s1482_s4 + $0x110] sm:$0xff] %v513_v22  ;;  %v515_v32 = vmax.f32 %v451_v24, 0.0  ;;  %v823_v33 = vunpack.c.l.bf16 %v919_v21  ;;  %v893_v24 = vld [vmem:[%s1478_s0 + $0xc8] sm:$0xff]  }
  0x3d   :  { %578 = vst [vmem:[%s1482_s4 + $0x118] sm:$0xff] %v514_v23  ;;  %v696_v34 = vunpack.c.h.bf16 %v888_v16  ;;  %v824_v35 = vunpack.c.h.bf16 %v919_v21  ;;  %v390_v38 = vadd.f32 %v976_v7, %v320_v28  ;;  %v321_v39 = vmul.f32 %v695_v29, %v962_v1 }
  0x3e   :  { %v516_v36 = vmax.f32 %v452_v26, 0.0  ;;  %v453_v37 = vadd.f32 %v819_v18, %v389_v27  ;;  %579 = vst [vmem:[%s1482_s4 + $0x120] sm:$0xff] %v515_v32  ;;  %v699_v42 = vunpack.c.l.bf16 %v889_v30  ;;  %v827_v43 = vunpack.c.l.bf16 %v920_v31 }
  0x3f   :  { %v322_v41 = vmul.f32 %v696_v34, %v962_v1  ;;  %v700_v44 = vunpack.c.h.bf16 %v889_v30  ;;  %v454_v47 = vadd.f32 %v820_v25, %v390_v38  ;;  %v391_v48 = vadd.f32 %v976_v7, %v321_v39  ;;  %v924_v25 = vld [vmem:[%s1481_s3 + $0xc8] sm:$0xff]   ;;  %v894_v34 = vld [vmem:[%s1478_s0 + $0xd0] sm:$0xff]  }
  0x40   :  { %580 = vst [vmem:[%s1482_s4 + $0x128] sm:$0xff] %v516_v36  ;;  %v517_v46 = vmax.f32 %v453_v37, 0.0  ;;  %v828_v49 = vunpack.c.h.bf16 %v920_v31  ;;  %v323_v51 = vmul.f32 %v699_v42, %v962_v1  ;;  %v703_v53 = vunpack.c.l.bf16 %v890_v40  ;;  %v925_v39 = vld [vmem:[%s1481_s3 + $0xd0] sm:$0xff]  }
  0x41   :  { %v392_v50 = vadd.f32 %v976_v7, %v322_v41  ;;  %v324_v52 = vmul.f32 %v700_v44, %v962_v1  ;;  %v518_v55 = vmax.f32 %v454_v47, 0.0  ;;  %v455_v56 = vadd.f32 %v823_v33, %v391_v48  ;;  %v895_v48 = vld [vmem:[%s1478_s0 + $0xd8] sm:$0xff]  }
  0x42   :  { %581 = vst [vmem:[%s1482_s4 + $0x130] sm:$0xff] %v517_v46  ;;  %v831_v57 = vunpack.c.l.bf16 %v921_v45  ;;  %v704_v58 = vunpack.c.h.bf16 %v890_v40  ;;  %v393_v60 = vadd.f32 %v976_v7, %v323_v51  ;;  %v325_v62 = vmul.f32 %v703_v53, %v962_v1 }
  0x43   :  { %v456_v59 = vadd.f32 %v824_v35, %v392_v50  ;;  %v394_v61 = vadd.f32 %v976_v7, %v324_v52  ;;  %582 = vst [vmem:[%s1482_s4 + $0x138] sm:$0xff] %v518_v55  ;;  %v519_v0 = vmax.f32 %v455_v56, 0.0  ;;  %v832_v2 = vunpack.c.h.bf16 %v921_v45 }
  0x44   :  { %v326_v3 = vmul.f32 %v704_v58, %v962_v1  ;;  %v707_v4 = vunpack.c.l.bf16 %v891_v54  ;;  %v457_v6 = vadd.f32 %v827_v43, %v393_v60  ;;  %v395_v9 = vadd.f32 %v976_v7, %v325_v62 }
  0x45   :  { %v520_v5 = vmax.f32 %v456_v59, 0.0  ;;  %v458_v8 = vadd.f32 %v828_v49, %v394_v61  ;;  %583 = vst [vmem:[%s1482_s4 + $0x140] sm:$0xff] %v519_v0  ;;  %v835_v12 = vunpack.c.l.bf16 %v922_v63  ;;  %v708_v14 = vunpack.c.h.bf16 %v891_v54 }
  0x46   :  { %v396_v11 = vadd.f32 %v976_v7, %v326_v3  ;;  %v327_v13 = vmul.f32 %v707_v4, %v962_v1  ;;  %v521_v16 = vmax.f32 %v457_v6, 0.0  ;;  %v459_v18 = vadd.f32 %v831_v57, %v395_v9  ;;  %v926_v57 = vld [vmem:[%s1481_s3 + $0xd8] sm:$0xff]   ;;  %v896_v3 = vld [vmem:[%s1478_s0 + $0xe0] sm:$0xff]  }
  0x47   :  { %584 = vst [vmem:[%s1482_s4 + $0x148] sm:$0xff] %v520_v5  ;;  %v522_v17 = vmax.f32 %v458_v8, 0.0  ;;  %v836_v19 = vunpack.c.h.bf16 %v922_v63  ;;  %v328_v22 = vmul.f32 %v708_v14, %v962_v1  ;;  %v711_v23 = vunpack.c.l.bf16 %v892_v10  ;;  %v927_v9 = vld [vmem:[%s1481_s3 + $0xe0] sm:$0xff]  }
  0x48   :  { %v460_v20 = vadd.f32 %v832_v2, %v396_v11  ;;  %v397_v21 = vadd.f32 %v976_v7, %v327_v13  ;;  %585 = vst [vmem:[%s1482_s4 + $0x150] sm:$0xff] %v521_v16  ;;  %v523_v26 = vmax.f32 %v459_v18, 0.0  ;;  %v839_v27 = vunpack.c.l.bf16 %v923_v15  ;;  %v897_v18 = vld [vmem:[%s1478_s0 + $0xe8] sm:$0xff]  }
  0x49   :  { %586 = vst [vmem:[%s1482_s4 + $0x158] sm:$0xff] %v522_v17  ;;  %v712_v28 = vunpack.c.h.bf16 %v892_v10  ;;  %v840_v29 = vunpack.c.h.bf16 %v923_v15  ;;  %v398_v32 = vadd.f32 %v976_v7, %v328_v22  ;;  %v329_v33 = vmul.f32 %v711_v23, %v962_v1 }
  0x4a   :  { %v524_v30 = vmax.f32 %v460_v20, 0.0  ;;  %v461_v31 = vadd.f32 %v835_v12, %v397_v21  ;;  %587 = vst [vmem:[%s1482_s4 + $0x160] sm:$0xff] %v523_v26  ;;  %v715_v36 = vunpack.c.l.bf16 %v893_v24  ;;  %v843_v37 = vunpack.c.l.bf16 %v924_v25 }
  0x4b   :  { %v330_v35 = vmul.f32 %v712_v28, %v962_v1  ;;  %v716_v38 = vunpack.c.h.bf16 %v893_v24  ;;  %v462_v41 = vadd.f32 %v836_v19, %v398_v32  ;;  %v399_v42 = vadd.f32 %v976_v7, %v329_v33  ;;  %v928_v19 = vld [vmem:[%s1481_s3 + $0xe8] sm:$0xff]   ;;  %v898_v28 = vld [vmem:[%s1478_s0 + $0xf0] sm:$0xff]  }
  0x4c   :  { %588 = vst [vmem:[%s1482_s4 + $0x168] sm:$0xff] %v524_v30  ;;  %v525_v40 = vmax.f32 %v461_v31, 0.0  ;;  %v844_v43 = vunpack.c.h.bf16 %v924_v25  ;;  %v331_v45 = vmul.f32 %v715_v36, %v962_v1  ;;  %v719_v47 = vunpack.c.l.bf16 %v894_v34  ;;  %v929_v33 = vld [vmem:[%s1481_s3 + $0xf0] sm:$0xff]  }
  0x4d   :  { %v400_v44 = vadd.f32 %v976_v7, %v330_v35  ;;  %v332_v46 = vmul.f32 %v716_v38, %v962_v1  ;;  %v526_v49 = vmax.f32 %v462_v41, 0.0  ;;  %v463_v50 = vadd.f32 %v839_v27, %v399_v42  ;;  %v899_v42 = vld [vmem:[%s1478_s0 + $0xf8] sm:$0xff]  }
  0x4e   :  { %589 = vst [vmem:[%s1482_s4 + $0x170] sm:$0xff] %v525_v40  ;;  %v847_v51 = vunpack.c.l.bf16 %v925_v39  ;;  %v720_v52 = vunpack.c.h.bf16 %v894_v34  ;;  %v401_v54 = vadd.f32 %v976_v7, %v331_v45  ;;  %v333_v56 = vmul.f32 %v719_v47, %v962_v1 }
  0x4f   :  { %v464_v53 = vadd.f32 %v840_v29, %v400_v44  ;;  %v402_v55 = vadd.f32 %v976_v7, %v332_v46  ;;  %590 = vst [vmem:[%s1482_s4 + $0x178] sm:$0xff] %v526_v49  ;;  %v527_v58 = vmax.f32 %v463_v50, 0.0  ;;  %v848_v59 = vunpack.c.h.bf16 %v925_v39 }
  0x50   :  { %v334_v60 = vmul.f32 %v720_v52, %v962_v1  ;;  %v723_v61 = vunpack.c.l.bf16 %v895_v48  ;;  %v465_v63 = vadd.f32 %v843_v37, %v401_v54  ;;  %v403_v2 = vadd.f32 %v976_v7, %v333_v56 }
  0x51   :  { %v528_v62 = vmax.f32 %v464_v53, 0.0  ;;  %v466_v0 = vadd.f32 %v844_v43, %v402_v55  ;;  %591 = vst [vmem:[%s1482_s4 + $0x180] sm:$0xff] %v527_v58  ;;  %v851_v5 = vunpack.c.l.bf16 %v926_v57  ;;  %v724_v8 = vunpack.c.h.bf16 %v895_v48 }
  0x52   :  { %v404_v4 = vadd.f32 %v976_v7, %v334_v60  ;;  %v335_v6 = vmul.f32 %v723_v61, %v962_v1  ;;  %v529_v10 = vmax.f32 %v465_v63, 0.0  ;;  %v467_v12 = vadd.f32 %v847_v51, %v403_v2  ;;  %v930_v51 = vld [vmem:[%s1481_s3 + $0xf8] sm:$0xff]  }
  0x53   :  { %592 = vst [vmem:[%s1482_s4 + $0x188] sm:$0xff] %v528_v62  ;;  %v530_v11 = vmax.f32 %v466_v0, 0.0  ;;  %v852_v13 = vunpack.c.h.bf16 %v926_v57  ;;  %v336_v16 = vmul.f32 %v724_v8, %v962_v1  ;;  %v727_v17 = vunpack.c.l.bf16 %v896_v3 }
  0x54   :  { %v468_v14 = vadd.f32 %v848_v59, %v404_v4  ;;  %v405_v15 = vadd.f32 %v976_v7, %v335_v6  ;;  %593 = vst [vmem:[%s1482_s4 + $0x190] sm:$0xff] %v529_v10  ;;  %v531_v20 = vmax.f32 %v467_v12, 0.0  ;;  %v855_v21 = vunpack.c.l.bf16 %v927_v9 }
  0x55   :  { %594 = vst [vmem:[%s1482_s4 + $0x198] sm:$0xff] %v530_v11  ;;  %v728_v22 = vunpack.c.h.bf16 %v896_v3  ;;  %v856_v23 = vunpack.c.h.bf16 %v927_v9  ;;  %v406_v26 = vadd.f32 %v976_v7, %v336_v16  ;;  %v337_v27 = vmul.f32 %v727_v17, %v962_v1 }
  0x56   :  { %v532_v24 = vmax.f32 %v468_v14, 0.0  ;;  %v469_v25 = vadd.f32 %v851_v5, %v405_v15  ;;  %595 = vst [vmem:[%s1482_s4 + $0x1a0] sm:$0xff] %v531_v20  ;;  %v731_v30 = vunpack.c.l.bf16 %v897_v18  ;;  %v859_v31 = vunpack.c.l.bf16 %v928_v19 }
  0x57   :  { %v338_v29 = vmul.f32 %v728_v22, %v962_v1  ;;  %v732_v32 = vunpack.c.h.bf16 %v897_v18  ;;  %v470_v35 = vadd.f32 %v852_v13, %v406_v26  ;;  %v407_v36 = vadd.f32 %v976_v7, %v337_v27 }
  0x58   :  { %596 = vst [vmem:[%s1482_s4 + $0x1a8] sm:$0xff] %v532_v24  ;;  %v533_v34 = vmax.f32 %v469_v25, 0.0  ;;  %v860_v37 = vunpack.c.h.bf16 %v928_v19  ;;  %v339_v39 = vmul.f32 %v731_v30, %v962_v1  ;;  %v735_v41 = vunpack.c.l.bf16 %v898_v28 }
  0x59   :  { %v408_v38 = vadd.f32 %v976_v7, %v338_v29  ;;  %v340_v40 = vmul.f32 %v732_v32, %v962_v1  ;;  %v534_v43 = vmax.f32 %v470_v35, 0.0  ;;  %v471_v44 = vadd.f32 %v855_v21, %v407_v36 }
  0x5a   :  { %597 = vst [vmem:[%s1482_s4 + $0x1b0] sm:$0xff] %v533_v34  ;;  %v863_v45 = vunpack.c.l.bf16 %v929_v33  ;;  %v736_v46 = vunpack.c.h.bf16 %v898_v28  ;;  %v409_v48 = vadd.f32 %v976_v7, %v339_v39  ;;  %v341_v50 = vmul.f32 %v735_v41, %v962_v1 }
  0x5b   :  { %v472_v47 = vadd.f32 %v856_v23, %v408_v38  ;;  %v410_v49 = vadd.f32 %v976_v7, %v340_v40  ;;  %598 = vst [vmem:[%s1482_s4 + $0x1b8] sm:$0xff] %v534_v43  ;;  %v535_v52 = vmax.f32 %v471_v44, 0.0  ;;  %v864_v53 = vunpack.c.h.bf16 %v929_v33 }
  0x5c   :  { %v342_v54 = vmul.f32 %v736_v46, %v962_v1  ;;  %v739_v55 = vunpack.c.l.bf16 %v899_v42  ;;  %v473_v57 = vadd.f32 %v859_v31, %v409_v48  ;;  %v411_v59 = vadd.f32 %v976_v7, %v341_v50 }
  0x5d   :  { %v536_v56 = vmax.f32 %v472_v47, 0.0  ;;  %v474_v58 = vadd.f32 %v860_v37, %v410_v49  ;;  %599 = vst [vmem:[%s1482_s4 + $0x1c0] sm:$0xff] %v535_v52  ;;  %v867_v61 = vunpack.c.l.bf16 %v930_v51  ;;  %v740_v63 = vunpack.c.h.bf16 %v899_v42 }
  0x5e   :  { %v412_v60 = vadd.f32 %v976_v7, %v342_v54  ;;  %v343_v62 = vmul.f32 %v739_v55, %v962_v1  ;;  %v537_v0 = vmax.f32 %v473_v57, 0.0  ;;  %v475_v3 = vadd.f32 %v863_v45, %v411_v59 }
  0x5f   :  { %600 = vst [vmem:[%s1482_s4 + $0x1c8] sm:$0xff] %v536_v56  ;;  %v538_v2 = vmax.f32 %v474_v58, 0.0  ;;  %v868_v6 = vunpack.c.h.bf16 %v930_v51  ;;  %v344_v8 = vmul.f32 %v740_v63, %v962_v1 }
  0x60   :  { %v476_v4 = vadd.f32 %v864_v53, %v412_v60  ;;  %v413_v5 = vadd.f32 %v976_v7, %v343_v62  ;;  %601 = vst [vmem:[%s1482_s4 + $0x1d0] sm:$0xff] %v537_v0  ;;  %v539_v9 = vmax.f32 %v475_v3, 0.0 }
  0x61   :  { %602 = vst [vmem:[%s1482_s4 + $0x1d8] sm:$0xff] %v538_v2  ;;  %v414_v12 = vadd.f32 %v976_v7, %v344_v8 }
  0x62   :  { %v540_v10 = vmax.f32 %v476_v4, 0.0  ;;  %v477_v11 = vadd.f32 %v867_v61, %v413_v5  ;;  %603 = vst [vmem:[%s1482_s4 + $0x1e0] sm:$0xff] %v539_v9 }
  0x63   :  { %v478_v13 = vadd.f32 %v868_v6, %v414_v12 }
  0x64   :  { %604 = vst [vmem:[%s1482_s4 + $0x1e8] sm:$0xff] %v540_v10  ;;  %v541_v1 = vmax.f32 %v477_v11, 0.0 }
  0x65   :  { %v542_v14 = vmax.f32 %v478_v13, 0.0 }
  0x66   :  { %605 = vst [vmem:[%s1482_s4 + $0x1f0] sm:$0xff] %v541_v1 }
  0x67   :  { %606 = vst [vmem:[%s1482_s4 + $0x1f8] sm:$0xff] %v542_v14 }

</bundles_post_ra>
